<compile_context>
chip_gen: v6e
topology: v6e:2x2x1
jax: 0.10.0
libtpu: 0.0.40
codegen_flags: <defaults>
</compile_context>

<pallas_src>
import jax
import jax.numpy as jnp
from jax.experimental import pallas as pl
from jax.experimental.pallas import tpu as pltpu

# Small, lane-aligned stand-ins for the real 2048-dim latent/hidden.
LATENT_DIM = 128
HIDDEN_DIM = 128
NUM_BINARY = 2
NUM_METHOD = 7
NUM_CLASSES = NUM_BINARY + NUM_METHOD
HEAD_PAD = 128           # classifier heads zero-padded to a full lane so stores are unmasked

C_IN = 3
KH = KW = 3
STRIDE = 2
PAD = 1


# ----------------------------- Pallas kernels ------------------------------

def _backbone_pool_proj_kernel(col_ref, w_ref, b_ref, pool_ref, wih_ref,
                               fmap_ref, xproj_ref):
    """Conv (K-major im2col matmul) + bias + NCHW writeback + AdaptiveAvgPool2d(1) +
    LSTM input projection, fused per image-tile.

    col_ref  : (K, ipt*P)    bf16   K-major im2col patches for `ipt` images (P = OH*OW)
    w_ref    : (O, K)        bf16   conv weight (output-channel-major)
    b_ref    : (O, 1)        f32    conv bias (broadcast over lanes)
    pool_ref : (ipt*P, ipt)  bf16   block-diagonal 1/P pooling matrix
    wih_ref  : (O, 4H)       bf16   LSTM W_ih^T (this LSTM has no bias)
    fmap_ref : (ipt, O, P)   f32    NCHW feature map (spatial flattened)
    xproj_ref: (1, ipt, 4H)  f32    pooled features already projected to gate space
    """
    ipt, _, p_dim = fmap_ref.shape

    w = w_ref[...]
    col = col_ref[...]

    # (O, K) @ (K, ipt*P) -> f32 MXU accumulation; bias added on the VPU.
    slab = jnp.dot(w, col, preferred_element_type=jnp.float32) + b_ref[...]   # (O, ipt*P)

    # NCHW writeback: per-image lane slices, no transpose.
    for n in range(ipt):                                                      # static unroll
        fmap_ref[n] = slab[:, n * p_dim:(n + 1) * p_dim].astype(fmap_ref.dtype)

    # AdaptiveAvgPool2d(1) via conv linearity: mean_p(W @ col_p + b) == W @ mean_p(col_p) + b.
    colmean = jnp.dot(col, pool_ref[...], preferred_element_type=jnp.float32)  # (K, ipt)
    pooled_t = (jnp.dot(w, colmean.astype(jnp.bfloat16),
                        preferred_element_type=jnp.float32) + b_ref[...])      # (O, ipt)
    pooled = pooled_t.T                                                         # (ipt, O) tiny

    # Hoisted LSTM input projection (bias-free): pooled @ W_ih^T.
    xproj_ref[0] = jnp.dot(pooled.astype(jnp.bfloat16), wih_ref[...],
                           preferred_element_type=jnp.float32).astype(xproj_ref.dtype)


def _lstm_head_kernel(xp_ref, whh_ref, wh_ref, bh_ref, logits_ref):
    """Whole LSTM (statically unrolled over the T "time" steps, which are the module's
    batch axis because batch_first=False) with mean(dim=1) + both classifier heads fused.

    xp_ref    : (T, Bq, 4H) f32  pre-projected inputs (x @ W_ih^T)
    whh_ref   : (H, 4H)     bf16 recurrent weight (transposed)
    wh_ref    : (H, 128)    f32  [binary | method] head weights, zero-padded to 128 lanes
    bh_ref    : (1, 128)    f32  padded head biases
    logits_ref: (T, 128)    f32
    """
    T, Bq, _ = xp_ref.shape
    H = whh_ref.shape[0]
    whh = whh_ref[...]

    h = jnp.zeros((Bq, H), jnp.float32)
    c = jnp.zeros((Bq, H), jnp.float32)
    pooled_rows = []
    for t in range(T):                                   # static unroll; h/c live in vregs
        gates = xp_ref[t]
        if t > 0:                                        # h_0 == 0 -> recurrence term vanishes
            gates = gates + jnp.dot(h.astype(jnp.bfloat16), whh,
                                    preferred_element_type=jnp.float32)   # (Bq, 4H)
        # PyTorch gate order: i, f, g, o (H = 128 -> lane-aligned slices).
        i = jax.nn.sigmoid(gates[:, 0 * H:1 * H])
        f = jax.nn.sigmoid(gates[:, 1 * H:2 * H])
        g = jnp.tanh(gates[:, 2 * H:3 * H])
        o = jax.nn.sigmoid(gates[:, 3 * H:4 * H])
        c = f * c + i * g
        h = o * jnp.tanh(c)
        # pooled[t] = torch.mean(x_lstm, dim=1)[t]  (mean over the LSTM "batch" axis).
        pooled_rows.append(jnp.mean(h, axis=0, keepdims=True))            # (1, H)

    pooled = jnp.concatenate(pooled_rows, axis=0)                          # (T, H)
    # Both Linear heads as one lane-dense matmul (dropout = identity at inference).
    logits_ref[...] = (jnp.dot(pooled, wh_ref[...], preferred_element_type=jnp.float32)
                       + bh_ref[...]).astype(logits_ref.dtype)


# ------------------------------ Wrappers ------------------------------------

def _im2col_kmajor(x_nchw, kh, kw, stride, pad):
    """(N, C, H, W) -> (C*kh*kw, N*OH*OW) K-major patches, K order (c, ki, kj)."""
    N, C, H, W = x_nchw.shape
    OH = (H + 2 * pad - kh) // stride + 1
    OW = (W + 2 * pad - kw) // stride + 1
    xp = jnp.pad(x_nchw, ((0, 0), (0, 0), (pad, pad), (pad, pad)))
    pats = []
    for i in range(kh):
        for j in range(kw):
            pats.append(xp[:, :, i:i + stride * OH:stride, j:j + stride * OW:stride])
    col = jnp.stack(pats, axis=2)                              # (N, C, kh*kw, OH, OW)
    col = col.transpose(1, 2, 0, 3, 4).reshape(C * kh * kw, N * OH * OW)
    return col, OH, OW


def backbone_pool_proj(col, wmat, bias, pool_w, wih_t, n_imgs, spatial, ipt):
    """Gridded K-major conv matmul with fused avgpool + LSTM input projection."""
    O, K = wmat.shape
    G = wih_t.shape[1]
    n_tiles = n_imgs // ipt
    return pl.pallas_call(
        _backbone_pool_proj_kernel,
        out_shape=(jax.ShapeDtypeStruct((n_imgs, O, spatial), jnp.float32),
                   jax.ShapeDtypeStruct((n_tiles, ipt, G), jnp.float32)),
        grid_spec=pltpu.PrefetchScalarGridSpec(
            num_scalar_prefetch=0,
            grid=(n_tiles,),
            in_specs=[
                pl.BlockSpec((K, ipt * spatial), lambda i: (0, i)),
                pl.BlockSpec((O, K), lambda i: (0, 0)),
                pl.BlockSpec((O, 1), lambda i: (0, 0)),
                pl.BlockSpec((ipt * spatial, ipt), lambda i: (0, 0)),
                pl.BlockSpec((O, G), lambda i: (0, 0)),
            ],
            out_specs=[pl.BlockSpec((ipt, O, spatial), lambda i: (i, 0, 0)),
                       pl.BlockSpec((1, ipt, G), lambda i: (i, 0, 0))],
        ),
        compiler_params=pltpu.CompilerParams(dimension_semantics=("parallel",)),
    )(col, wmat, bias, pool_w, wih_t)


def lstm_head_forward(x_proj, whh_t, w_heads, b_heads):
    """x_proj: (T, Bq, 4H) pre-projected inputs (T = module batch axis treated as time).
    Single kernel invocation; returns per-time-step logits (T, HEAD_PAD)."""
    T, Bq, G = x_proj.shape
    H = whh_t.shape[0]
    NCP = w_heads.shape[1]
    return pl.pallas_call(
        _lstm_head_kernel,
        out_shape=jax.ShapeDtypeStruct((T, NCP), jnp.float32),
        grid_spec=pltpu.PrefetchScalarGridSpec(
            num_scalar_prefetch=0,
            grid=(1,),
            in_specs=[
                pl.BlockSpec((T, Bq, G), lambda i: (0, 0, 0)),
                pl.BlockSpec((H, G), lambda i: (0, 0)),
                pl.BlockSpec((H, NCP), lambda i: (0, 0)),
                pl.BlockSpec((1, NCP), lambda i: (0, 0)),
            ],
            out_specs=pl.BlockSpec((T, NCP), lambda i: (0, 0)),
        ),
        compiler_params=pltpu.CompilerParams(dimension_semantics=("arbitrary",)),
    )(x_proj, whh_t, w_heads, b_heads)


def init_params(key):
    ks = jax.random.split(key, 8)

    def u(k, shape, bound):
        return jax.random.uniform(k, shape, jnp.float32, -bound, bound)

    fan_conv = C_IN * KH * KW
    s_conv = (1.0 / fan_conv) ** 0.5
    s_h = (1.0 / HIDDEN_DIM) ** 0.5

    conv_w = u(ks[0], (LATENT_DIM, C_IN, KH, KW), s_conv)     # torch OIHW layout
    conv_b = u(ks[1], (LATENT_DIM,), s_conv)
    w_ih = u(ks[2], (4 * HIDDEN_DIM, LATENT_DIM), s_h)        # torch weight_ih_l0 layout
    w_hh = u(ks[3], (4 * HIDDEN_DIM, HIDDEN_DIM), s_h)        # torch weight_hh_l0 layout
    wb = u(ks[4], (NUM_BINARY, HIDDEN_DIM), s_h)
    bb = u(ks[5], (NUM_BINARY,), s_h)
    wm = u(ks[6], (NUM_METHOD, HIDDEN_DIM), s_h)
    bm = u(ks[7], (NUM_METHOD,), s_h)

    # Concatenated [binary | method] heads, zero-padded to 128 lanes for unmasked stores.
    w_heads = jnp.zeros((HIDDEN_DIM, HEAD_PAD), jnp.float32)
    w_heads = w_heads.at[:, :NUM_BINARY].set(wb.T).at[:, NUM_BINARY:NUM_CLASSES].set(wm.T)
    b_heads = jnp.zeros((1, HEAD_PAD), jnp.float32)
    b_heads = b_heads.at[0, :NUM_BINARY].set(bb).at[0, NUM_BINARY:NUM_CLASSES].set(bm)

    # Pre-transpose / pre-pack once; matmul operands in bf16, f32 accumulation in-kernel.
    return dict(
        conv_wmat=conv_w.reshape(LATENT_DIM, C_IN * KH * KW).astype(jnp.bfloat16),  # (O, K)
        conv_b=conv_b.reshape(LATENT_DIM, 1),                  # (O, 1) f32 bias epilogue
        w_ih_t=w_ih.T.astype(jnp.bfloat16),                    # (LATENT, 4H)
        w_hh_t=w_hh.T.astype(jnp.bfloat16),                    # (H, 4H)
        w_heads=w_heads,                                       # (H, 128) f32
        b_heads=b_heads,                                       # (1, 128) f32
    )


@jax.jit
def forward(params, x):
    # x: (B, S, C, H, W)
    B, S, C, H, W = x.shape
    N = B * S
    xf = x.reshape(N, C, H, W).astype(jnp.bfloat16)

    col, OH, OW = _im2col_kmajor(xf, KH, KW, STRIDE, PAD)      # (K, N*P) bf16, K-major
    P = OH * OW

    # 4 images per conv tile: >=2 grid steps per TensorCore on v7x megacore, and enough
    # pipeline depth on v5e/v6e to hide the f32 fmap writeback behind compute.
    ipt = next(i for i in (4, 2, 1) if N % i == 0)

    # Block-diagonal pooling matrix: rows n*P..(n+1)*P-1 hold 1/P in column n.
    pool_w = (jnp.repeat(jnp.eye(ipt, dtype=jnp.float32), P, axis=0) / P).astype(jnp.bfloat16)

    fmap_flat, xproj_tiles = backbone_pool_proj(
        col, params["conv_wmat"], params["conv_b"], pool_w, params["w_ih_t"], N, P, ipt)

    fmap = fmap_flat.reshape(N, LATENT_DIM, OH, OW)            # free reshape: NCHW
    # Axis 0 of the LSTM input is the module's batch axis (batch_first=False quirk) = "time".
    xproj_seq = xproj_tiles.reshape(B, S, 4 * HIDDEN_DIM)

    logits = lstm_head_forward(
        xproj_seq, params["w_hh_t"], params["w_heads"], params["b_heads"])   # (B, 128)
    return fmap, logits[:, :NUM_BINARY], logits[:, NUM_BINARY:NUM_CLASSES]


if __name__ == "__main__":
    key = jax.random.PRNGKey(0)
    pkey, xkey = jax.random.split(key)
    params = init_params(pkey)

    B, S, C, H, W = 2, 8, 3, 32, 32
    x = jax.random.normal(xkey, (B, S, C, H, W), jnp.float32)

    fmap, logits_bin, logits_meth = forward(params, x)
    jax.block_until_ready((fmap, logits_bin, logits_meth))

    assert fmap.shape == (B * S, LATENT_DIM, H // 2, W // 2)
    assert logits_bin.shape == (B, NUM_BINARY)
    assert logits_meth.shape == (B, NUM_METHOD)
    print("KERNEL_OK")
</pallas_src>

<mosaic_0001>
module attributes {stable_mosaic.version = 11 : i64} {
  func.func @_backbone_pool_proj_kernel(%arg0: i32, %arg1: memref<27x1024xbf16, #tpu.memory_space<vmem>>, %arg2: memref<128x27xbf16, #tpu.memory_space<vmem>>, %arg3: memref<128x1xf32, #tpu.memory_space<vmem>>, %arg4: memref<1024x4xbf16, #tpu.memory_space<vmem>>, %arg5: memref<128x512xbf16, #tpu.memory_space<vmem>>, %arg6: memref<4x128x256xf32, #tpu.memory_space<vmem>>, %arg7: memref<1x4x512xf32, #tpu.memory_space<vmem>>) attributes {dimension_semantics = [#tpu.dimension_semantics<parallel>], iteration_bounds = array<i64: 4>, scalar_prefetch = 0 : i64, scratch_operands = 0 : i64, tpu.core_type = #tpu.core_type<tc>, window_params = [{transform_indices = @transform_0, window_bounds = array<i64: 27, 1024>}, {pipeline_mode = #tpu.pipeline_mode<synchronous>, transform_indices = @transform_1, window_bounds = array<i64: 128, 27>}, {pipeline_mode = #tpu.pipeline_mode<synchronous>, transform_indices = @transform_2, window_bounds = array<i64: 128, 1>}, {pipeline_mode = #tpu.pipeline_mode<synchronous>, transform_indices = @transform_3, window_bounds = array<i64: 1024, 4>}, {pipeline_mode = #tpu.pipeline_mode<synchronous>, transform_indices = @transform_4, window_bounds = array<i64: 128, 512>}, {transform_indices = @transform_5, window_bounds = array<i64: 4, 128, 256>}, {transform_indices = @transform_6, window_bounds = array<i64: 1, 4, 512>}]} {
    %c0 = arith.constant 0 : index
    %c0_0 = arith.constant 0 : index
    %0 = vector.load %arg2[%c0, %c0_0] : memref<128x27xbf16, #tpu.memory_space<vmem>>, vector<128x27xbf16>
    %c0_1 = arith.constant 0 : index
    %c0_2 = arith.constant 0 : index
    %1 = vector.load %arg1[%c0_1, %c0_2] : memref<27x1024xbf16, #tpu.memory_space<vmem>>, vector<27x1024xbf16>
    %cst = arith.constant dense<0.000000e+00> : vector<128x1024xf32>
    %2 = tpu.matmul %0, %1, %cst {dimension_numbers = #tpu.dot_dimension_numbers<[1], [0], [0], [1], [0, 0, 1, 1], [], []>} : vector<128x27xbf16>, vector<27x1024xbf16>, vector<128x1024xf32> -> vector<128x1024xf32>
    %c0_3 = arith.constant 0 : index
    %c0_4 = arith.constant 0 : index
    %3 = vector.load %arg3[%c0_3, %c0_4] : memref<128x1xf32, #tpu.memory_space<vmem>>, vector<128x1xf32>
    %4 = vector.broadcast %3 : vector<128x1xf32> to vector<128x1024xf32>
    %5 = arith.addf %2, %4 : vector<128x1024xf32>
    %6 = vector.extract_strided_slice %5 {offsets = [0, 0], sizes = [128, 256], strides = [1, 1]} : vector<128x1024xf32> to vector<128x256xf32>
    %c0_5 = arith.constant 0 : index
    %c0_6 = arith.constant 0 : index
    %c0_7 = arith.constant 0 : index
    %7 = vector.load %arg6[%c0_5, %c0_6, %c0_7] : memref<4x128x256xf32, #tpu.memory_space<vmem>>, vector<1x128x256xf32>
    %8 = vector.shape_cast %7 : vector<1x128x256xf32> to vector<128x256xf32>
    %9 = vector.shape_cast %6 : vector<128x256xf32> to vector<1x128x256xf32>
    tpu.vector_store %arg6[%c0_5, %c0_6, %c0_7], %9 {strides = array<i32>} : memref<4x128x256xf32, #tpu.memory_space<vmem>>, vector<1x128x256xf32>,
    %10 = vector.extract_strided_slice %5 {offsets = [0, 256], sizes = [128, 256], strides = [1, 1]} : vector<128x1024xf32> to vector<128x256xf32>
    %c1 = arith.constant 1 : index
    %c0_8 = arith.constant 0 : index
    %c0_9 = arith.constant 0 : index
    %11 = vector.load %arg6[%c1, %c0_8, %c0_9] : memref<4x128x256xf32, #tpu.memory_space<vmem>>, vector<1x128x256xf32>
    %12 = vector.shape_cast %11 : vector<1x128x256xf32> to vector<128x256xf32>
    %13 = vector.shape_cast %10 : vector<128x256xf32> to vector<1x128x256xf32>
    tpu.vector_store %arg6[%c1, %c0_8, %c0_9], %13 {strides = array<i32>} : memref<4x128x256xf32, #tpu.memory_space<vmem>>, vector<1x128x256xf32>,
    %14 = vector.extract_strided_slice %5 {offsets = [0, 512], sizes = [128, 256], strides = [1, 1]} : vector<128x1024xf32> to vector<128x256xf32>
    %c2 = arith.constant 2 : index
    %c0_10 = arith.constant 0 : index
    %c0_11 = arith.constant 0 : index
    %15 = vector.load %arg6[%c2, %c0_10, %c0_11] : memref<4x128x256xf32, #tpu.memory_space<vmem>>, vector<1x128x256xf32>
    %16 = vector.shape_cast %15 : vector<1x128x256xf32> to vector<128x256xf32>
    %17 = vector.shape_cast %14 : vector<128x256xf32> to vector<1x128x256xf32>
    tpu.vector_store %arg6[%c2, %c0_10, %c0_11], %17 {strides = array<i32>} : memref<4x128x256xf32, #tpu.memory_space<vmem>>, vector<1x128x256xf32>,
    %18 = vector.extract_strided_slice %5 {offsets = [0, 768], sizes = [128, 256], strides = [1, 1]} : vector<128x1024xf32> to vector<128x256xf32>
    %c3 = arith.constant 3 : index
    %c0_12 = arith.constant 0 : index
    %c0_13 = arith.constant 0 : index
    %19 = vector.load %arg6[%c3, %c0_12, %c0_13] : memref<4x128x256xf32, #tpu.memory_space<vmem>>, vector<1x128x256xf32>
    %20 = vector.shape_cast %19 : vector<1x128x256xf32> to vector<128x256xf32>
    %21 = vector.shape_cast %18 : vector<128x256xf32> to vector<1x128x256xf32>
    tpu.vector_store %arg6[%c3, %c0_12, %c0_13], %21 {strides = array<i32>} : memref<4x128x256xf32, #tpu.memory_space<vmem>>, vector<1x128x256xf32>,
    %c0_14 = arith.constant 0 : index
    %c0_15 = arith.constant 0 : index
    %22 = vector.load %arg4[%c0_14, %c0_15] : memref<1024x4xbf16, #tpu.memory_space<vmem>>, vector<1024x4xbf16>
    %cst_16 = arith.constant dense<0.000000e+00> : vector<27x4xf32>
    %23 = tpu.matmul %1, %22, %cst_16 {dimension_numbers = #tpu.dot_dimension_numbers<[1], [0], [0], [1], [0, 0, 1, 1], [], []>} : vector<27x1024xbf16>, vector<1024x4xbf16>, vector<27x4xf32> -> vector<27x4xf32>
    %24 = arith.truncf %23 : vector<27x4xf32> to vector<27x4xbf16>
    %cst_17 = arith.constant dense<0.000000e+00> : vector<128x4xf32>
    %25 = tpu.matmul %0, %24, %cst_17 {dimension_numbers = #tpu.dot_dimension_numbers<[1], [0], [0], [1], [0, 0, 1, 1], [], []>} : vector<128x27xbf16>, vector<27x4xbf16>, vector<128x4xf32> -> vector<128x4xf32>
    %c0_18 = arith.constant 0 : index
    %c0_19 = arith.constant 0 : index
    %26 = vector.load %arg3[%c0_18, %c0_19] : memref<128x1xf32, #tpu.memory_space<vmem>>, vector<128x1xf32>
    %27 = vector.broadcast %26 : vector<128x1xf32> to vector<128x4xf32>
    %28 = arith.addf %25, %27 : vector<128x4xf32>
    %29 = tpu.transpose %28, [1, 0] : vector<128x4xf32> -> vector<4x128xf32>
    %30 = arith.truncf %29 : vector<4x128xf32> to vector<4x128xbf16>
    %c0_20 = arith.constant 0 : index
    %c0_21 = arith.constant 0 : index
    %31 = vector.load %arg5[%c0_20, %c0_21] : memref<128x512xbf16, #tpu.memory_space<vmem>>, vector<128x512xbf16>
    %cst_22 = arith.constant dense<0.000000e+00> : vector<4x512xf32>
    %32 = tpu.matmul %30, %31, %cst_22 {dimension_numbers = #tpu.dot_dimension_numbers<[1], [0], [0], [1], [0, 0, 1, 1], [], []>} : vector<4x128xbf16>, vector<128x512xbf16>, vector<4x512xf32> -> vector<4x512xf32>
    %c0_23 = arith.constant 0 : index
    %c0_24 = arith.constant 0 : index
    %c0_25 = arith.constant 0 : index
    %33 = vector.load %arg7[%c0_23, %c0_24, %c0_25] : memref<1x4x512xf32, #tpu.memory_space<vmem>>, vector<1x4x512xf32>
    %34 = vector.shape_cast %33 : vector<1x4x512xf32> to vector<4x512xf32>
    %35 = vector.shape_cast %32 : vector<4x512xf32> to vector<1x4x512xf32>
    tpu.vector_store %arg7[%c0_23, %c0_24, %c0_25], %35 {strides = array<i32>} : memref<1x4x512xf32, #tpu.memory_space<vmem>>, vector<1x4x512xf32>,
    return
  }
  func.func @transform_0(%arg0: i32) -> (i32, i32) {
    %c0_i32 = arith.constant 0 : i32
    %c0_i32_0 = arith.constant 0 : i32
    return %c0_i32, %arg0 : i32, i32
  }
  func.func @transform_1(%arg0: i32) -> (i32, i32) {
    %c0_i32 = arith.constant 0 : i32
    %c0_i32_0 = arith.constant 0 : i32
    %c0_i32_1 = arith.constant 0 : i32
    return %c0_i32, %c0_i32_0 : i32, i32
  }
  func.func @transform_2(%arg0: i32) -> (i32, i32) {
    %c0_i32 = arith.constant 0 : i32
    %c0_i32_0 = arith.constant 0 : i32
    %c0_i32_1 = arith.constant 0 : i32
    return %c0_i32, %c0_i32_0 : i32, i32
  }
  func.func @transform_3(%arg0: i32) -> (i32, i32) {
    %c0_i32 = arith.constant 0 : i32
    %c0_i32_0 = arith.constant 0 : i32
    %c0_i32_1 = arith.constant 0 : i32
    return %c0_i32, %c0_i32_0 : i32, i32
  }
  func.func @transform_4(%arg0: i32) -> (i32, i32) {
    %c0_i32 = arith.constant 0 : i32
    %c0_i32_0 = arith.constant 0 : i32
    %c0_i32_1 = arith.constant 0 : i32
    return %c0_i32, %c0_i32_0 : i32, i32
  }
  func.func @transform_5(%arg0: i32) -> (i32, i32, i32) {
    %c0_i32 = arith.constant 0 : i32
    %c0_i32_0 = arith.constant 0 : i32
    %c0_i32_1 = arith.constant 0 : i32
    return %arg0, %c0_i32, %c0_i32_0 : i32, i32, i32
  }
  func.func @transform_6(%arg0: i32) -> (i32, i32, i32) {
    %c0_i32 = arith.constant 0 : i32
    %c0_i32_0 = arith.constant 0 : i32
    %c0_i32_1 = arith.constant 0 : i32
    return %arg0, %c0_i32, %c0_i32_0 : i32, i32, i32
  }
}

module attributes {stable_mosaic.version = 11 : i64} {
  func.func @_lstm_head_kernel(%arg0: i32, %arg1: memref<2x8x512xf32, #tpu.memory_space<vmem>>, %arg2: memref<128x512xbf16, #tpu.memory_space<vmem>>, %arg3: memref<128x128xf32, #tpu.memory_space<vmem>>, %arg4: memref<1x128xf32, #tpu.memory_space<vmem>>, %arg5: memref<2x128xf32, #tpu.memory_space<vmem>>) attributes {dimension_semantics = [#tpu.dimension_semantics<arbitrary>], iteration_bounds = array<i64: 1>, scalar_prefetch = 0 : i64, scratch_operands = 0 : i64, tpu.core_type = #tpu.core_type<tc>, window_params = [{pipeline_mode = #tpu.pipeline_mode<synchronous>, transform_indices = @transform_0, window_bounds = array<i64: 2, 8, 512>}, {pipeline_mode = #tpu.pipeline_mode<synchronous>, transform_indices = @transform_1, window_bounds = array<i64: 128, 512>}, {pipeline_mode = #tpu.pipeline_mode<synchronous>, transform_indices = @transform_2, window_bounds = array<i64: 128, 128>}, {pipeline_mode = #tpu.pipeline_mode<synchronous>, transform_indices = @transform_3, window_bounds = array<i64: 1, 128>}, {pipeline_mode = #tpu.pipeline_mode<synchronous>, transform_indices = @transform_4, window_bounds = array<i64: 2, 128>}]} {
    %c0 = arith.constant 0 : index
    %c0_0 = arith.constant 0 : index
    %0 = vector.load %arg2[%c0, %c0_0] : memref<128x512xbf16, #tpu.memory_space<vmem>>, vector<128x512xbf16>
    %cst = arith.constant 0.000000e+00 : f32
    %1 = vector.broadcast %cst : f32 to vector<8x128xf32>
    %c0_1 = arith.constant 0 : index
    %c0_2 = arith.constant 0 : index
    %c0_3 = arith.constant 0 : index
    %2 = vector.load %arg1[%c0_1, %c0_2, %c0_3] : memref<2x8x512xf32, #tpu.memory_space<vmem>>, vector<1x8x512xf32>
    %3 = vector.shape_cast %2 : vector<1x8x512xf32> to vector<8x512xf32>
    %4 = vector.extract_strided_slice %3 {offsets = [0, 0], sizes = [8, 128], strides = [1, 1]} : vector<8x512xf32> to vector<8x128xf32>
    %5 = arith.negf %4 : vector<8x128xf32>
    %6 = math.exp %5 : vector<8x128xf32>
    %cst_4 = arith.constant 1.000000e+00 : f32
    %7 = vector.broadcast %cst_4 : f32 to vector<8x128xf32>
    %8 = arith.addf %7, %6 : vector<8x128xf32>
    %9 = arith.divf %7, %8 : vector<8x128xf32>
    %10 = vector.extract_strided_slice %3 {offsets = [0, 128], sizes = [8, 128], strides = [1, 1]} : vector<8x512xf32> to vector<8x128xf32>
    %11 = arith.negf %10 : vector<8x128xf32>
    %12 = math.exp %11 : vector<8x128xf32>
    %cst_5 = arith.constant 1.000000e+00 : f32
    %13 = vector.broadcast %cst_5 : f32 to vector<8x128xf32>
    %14 = arith.addf %13, %12 : vector<8x128xf32>
    %15 = arith.divf %13, %14 : vector<8x128xf32>
    %16 = vector.extract_strided_slice %3 {offsets = [0, 256], sizes = [8, 128], strides = [1, 1]} : vector<8x512xf32> to vector<8x128xf32>
    %17 = math.tanh %16 : vector<8x128xf32>
    %18 = vector.extract_strided_slice %3 {offsets = [0, 384], sizes = [8, 128], strides = [1, 1]} : vector<8x512xf32> to vector<8x128xf32>
    %19 = arith.negf %18 : vector<8x128xf32>
    %20 = math.exp %19 : vector<8x128xf32>
    %cst_6 = arith.constant 1.000000e+00 : f32
    %21 = vector.broadcast %cst_6 : f32 to vector<8x128xf32>
    %22 = arith.addf %21, %20 : vector<8x128xf32>
    %23 = arith.divf %21, %22 : vector<8x128xf32>
    %24 = arith.mulf %15, %1 : vector<8x128xf32>
    %25 = arith.mulf %9, %17 : vector<8x128xf32>
    %26 = arith.addf %24, %25 : vector<8x128xf32>
    %27 = math.tanh %26 : vector<8x128xf32>
    %28 = arith.mulf %23, %27 : vector<8x128xf32>
    %cst_7 = arith.constant dense<0.000000e+00> : vector<128xf32>
    %29 = vector.multi_reduction <add>, %28, %cst_7 [0] : vector<8x128xf32> to vector<128xf32>
    %30 = vector.shape_cast %29 : vector<128xf32> to vector<1x128xf32>
    %cst_8 = arith.constant 8.000000e+00 : f32
    %31 = vector.broadcast %cst_8 : f32 to vector<1x128xf32>
    %32 = arith.divf %30, %31 : vector<1x128xf32>
    %c1 = arith.constant 1 : index
    %c0_9 = arith.constant 0 : index
    %c0_10 = arith.constant 0 : index
    %33 = vector.load %arg1[%c1, %c0_9, %c0_10] : memref<2x8x512xf32, #tpu.memory_space<vmem>>, vector<1x8x512xf32>
    %34 = vector.shape_cast %33 : vector<1x8x512xf32> to vector<8x512xf32>
    %35 = arith.truncf %28 : vector<8x128xf32> to vector<8x128xbf16>
    %cst_11 = arith.constant dense<0.000000e+00> : vector<8x512xf32>
    %36 = tpu.matmul %35, %0, %cst_11 {dimension_numbers = #tpu.dot_dimension_numbers<[1], [0], [0], [1], [0, 0, 1, 1], [], []>} : vector<8x128xbf16>, vector<128x512xbf16>, vector<8x512xf32> -> vector<8x512xf32>
    %37 = arith.addf %34, %36 : vector<8x512xf32>
    %38 = vector.extract_strided_slice %37 {offsets = [0, 0], sizes = [8, 128], strides = [1, 1]} : vector<8x512xf32> to vector<8x128xf32>
    %39 = arith.negf %38 : vector<8x128xf32>
    %40 = math.exp %39 : vector<8x128xf32>
    %cst_12 = arith.constant 1.000000e+00 : f32
    %41 = vector.broadcast %cst_12 : f32 to vector<8x128xf32>
    %42 = arith.addf %41, %40 : vector<8x128xf32>
    %43 = arith.divf %41, %42 : vector<8x128xf32>
    %44 = vector.extract_strided_slice %37 {offsets = [0, 128], sizes = [8, 128], strides = [1, 1]} : vector<8x512xf32> to vector<8x128xf32>
    %45 = arith.negf %44 : vector<8x128xf32>
    %46 = math.exp %45 : vector<8x128xf32>
    %cst_13 = arith.constant 1.000000e+00 : f32
    %47 = vector.broadcast %cst_13 : f32 to vector<8x128xf32>
    %48 = arith.addf %47, %46 : vector<8x128xf32>
    %49 = arith.divf %47, %48 : vector<8x128xf32>
    %50 = vector.extract_strided_slice %37 {offsets = [0, 256], sizes = [8, 128], strides = [1, 1]} : vector<8x512xf32> to vector<8x128xf32>
    %51 = math.tanh %50 : vector<8x128xf32>
    %52 = vector.extract_strided_slice %37 {offsets = [0, 384], sizes = [8, 128], strides = [1, 1]} : vector<8x512xf32> to vector<8x128xf32>
    %53 = arith.negf %52 : vector<8x128xf32>
    %54 = math.exp %53 : vector<8x128xf32>
    %cst_14 = arith.constant 1.000000e+00 : f32
    %55 = vector.broadcast %cst_14 : f32 to vector<8x128xf32>
    %56 = arith.addf %55, %54 : vector<8x128xf32>
    %57 = arith.divf %55, %56 : vector<8x128xf32>
    %58 = arith.mulf %49, %26 : vector<8x128xf32>
    %59 = arith.mulf %43, %51 : vector<8x128xf32>
    %60 = arith.addf %58, %59 : vector<8x128xf32>
    %61 = math.tanh %60 : vector<8x128xf32>
    %62 = arith.mulf %57, %61 : vector<8x128xf32>
    %cst_15 = arith.constant dense<0.000000e+00> : vector<128xf32>
    %63 = vector.multi_reduction <add>, %62, %cst_15 [0] : vector<8x128xf32> to vector<128xf32>
    %64 = vector.shape_cast %63 : vector<128xf32> to vector<1x128xf32>
    %cst_16 = arith.constant 8.000000e+00 : f32
    %65 = vector.broadcast %cst_16 : f32 to vector<1x128xf32>
    %66 = arith.divf %64, %65 : vector<1x128xf32>
    %67 = tpu.concatenate %32, %66 in 0 : vector<1x128xf32>, vector<1x128xf32> -> vector<2x128xf32>
    %c0_17 = arith.constant 0 : index
    %c0_18 = arith.constant 0 : index
    %68 = vector.load %arg3[%c0_17, %c0_18] : memref<128x128xf32, #tpu.memory_space<vmem>>, vector<128x128xf32>
    %cst_19 = arith.constant dense<0.000000e+00> : vector<2x128xf32>
    %69 = tpu.matmul %67, %68, %cst_19 {dimension_numbers = #tpu.dot_dimension_numbers<[1], [0], [0], [1], [0, 0, 1, 1], [], []>} : vector<2x128xf32>, vector<128x128xf32>, vector<2x128xf32> -> vector<2x128xf32>
    %c0_20 = arith.constant 0 : index
    %c0_21 = arith.constant 0 : index
    %70 = vector.load %arg4[%c0_20, %c0_21] : memref<1x128xf32, #tpu.memory_space<vmem>>, vector<1x128xf32>
    %71 = vector.broadcast %70 : vector<1x128xf32> to vector<2x128xf32>
    %72 = arith.addf %69, %71 : vector<2x128xf32>
    %c0_22 = arith.constant 0 : index
    %c0_23 = arith.constant 0 : index
    %73 = vector.load %arg5[%c0_22, %c0_23] : memref<2x128xf32, #tpu.memory_space<vmem>>, vector<2x128xf32>
    tpu.vector_store %arg5[%c0_22, %c0_23], %72 {strides = array<i32>} : memref<2x128xf32, #tpu.memory_space<vmem>>, vector<2x128xf32>,
    return
  }
  func.func @transform_0(%arg0: i32) -> (i32, i32, i32) {
    %c0_i32 = arith.constant 0 : i32
    %c0_i32_0 = arith.constant 0 : i32
    %c0_i32_1 = arith.constant 0 : i32
    %c0_i32_2 = arith.constant 0 : i32
    return %c0_i32, %c0_i32_0, %c0_i32_1 : i32, i32, i32
  }
  func.func @transform_1(%arg0: i32) -> (i32, i32) {
    %c0_i32 = arith.constant 0 : i32
    %c0_i32_0 = arith.constant 0 : i32
    %c0_i32_1 = arith.constant 0 : i32
    return %c0_i32, %c0_i32_0 : i32, i32
  }
  func.func @transform_2(%arg0: i32) -> (i32, i32) {
    %c0_i32 = arith.constant 0 : i32
    %c0_i32_0 = arith.constant 0 : i32
    %c0_i32_1 = arith.constant 0 : i32
    return %c0_i32, %c0_i32_0 : i32, i32
  }
  func.func @transform_3(%arg0: i32) -> (i32, i32) {
    %c0_i32 = arith.constant 0 : i32
    %c0_i32_0 = arith.constant 0 : i32
    %c0_i32_1 = arith.constant 0 : i32
    return %c0_i32, %c0_i32_0 : i32, i32
  }
  func.func @transform_4(%arg0: i32) -> (i32, i32) {
    %c0_i32 = arith.constant 0 : i32
    %c0_i32_0 = arith.constant 0 : i32
    %c0_i32_1 = arith.constant 0 : i32
    return %c0_i32, %c0_i32_0 : i32, i32
  }
}

</mosaic_0001>

<bundles_post_ra>
// kernel: forward.3
= control target key start
LH: loop header
LB: loop body
LE: loop exit
PB: predicated region body
PF: predicated region fallthrough
CT: control target
= control target key end

     0   :  { %v647_v1 = vmov 0   ;;  %v648_v56 = vmov 0.0   ;;  %vm649_vm0 = vmmov 0   ;;  %vm369_vm1 = vcmask 1040384   ;;  %s859_s1 = inlined_call_operand.vmem [shape: bf16[128,512], index: 1, kind: input, shape index: {}]   ;;  %s860_s0 = inlined_call_operand.vmem [shape: f32[2,8,512], index: 0, kind: input, shape index: {}]   ;;  %s861_s2 = inlined_call_operand.vmem [shape: f32[128,128], index: 2, kind: input, shape index: {}]   ;;  %s862_s3 = inlined_call_operand.vmem [shape: f32[1,128], index: 3, kind: input, shape index: {}]   ;;  %s863_s4 = inlined_call_operand.vmem [shape: f32[2,128], index: 4, kind: output, shape index: {}]  }
   0x1   :  { %v567_v0 = vld [vmem:[%s859_s1 + $0xe4] ss:$16 sps:$4 sm:$0xff]   ;;  %284 = vmatprep.mubr.bf16.mxu0 %v647_v1  ;;  %325 = vmatprep.mubr.bf16.mxu1 %v647_v1  ;;  %v569_v2 = vld [vmem:[%s859_s1 + $0xe0] ss:$16 sps:$4 sm:$0xff]   ;;  %v578_v6 = vld [vmem:[%s859_s1 + $0xec] ss:$16 sps:$4 sm:$0xff]  }
   0x2   :  { %252 = vmatprep.subr.bf16.mxu0 %v567_v0  ;;  %v570_v3 = vld [vmem:[%s859_s1 + $0xc4] ss:$16 sps:$4 sm:$0xff]   ;;  %v572_v4 = vld [vmem:[%s859_s1 + $0xc0] ss:$16 sps:$4 sm:$0xff]   ;;  %v581_v7 = vld [vmem:[%s859_s1 + $0xe8] ss:$16 sps:$4 sm:$0xff]   ;;  %293 = vmatprep.subr.bf16.mxu1 %v578_v6 }
   0x3   :  { %253 = vmatpush1.bf16.msra.mxu0 %v569_v2  ;;  %v573_v5 = vld [vmem:[%s859_s1 + $0xa4] ss:$16 sps:$4 sm:$0xff]   ;;  %v575_v8 = vld [vmem:[%s859_s1 + $0xa0] ss:$16 sps:$4 sm:$0xff]   ;;  %294 = vmatpush1.bf16.msra.mxu1 %v581_v7  ;;  %v584_v10 = vld [vmem:[%s859_s1 + $0xcc] ss:$16 sps:$4 sm:$0xff]  }
   0x4   :  { %254 = vmatprep.subr.bf16.mxu0 %v570_v3  ;;  %v576_v9 = vld [vmem:[%s859_s1 + $0x84] ss:$16 sps:$4 sm:$0xff]   ;;  %v587_v11 = vld [vmem:[%s859_s1 + $0xc8] ss:$16 sps:$4 sm:$0xff]   ;;  %295 = vmatprep.subr.bf16.mxu1 %v584_v10  ;;  %v580_v12 = vld [vmem:[%s859_s1 + $0x80] ss:$16 sps:$4 sm:$0xff]  }
   0x5   :  { %v582_v13 = vld [vmem:[%s859_s1 + $0x64] ss:$16 sps:$4 sm:$0xff]   ;;  %v590_v14 = vld [vmem:[%s859_s1 + $0xac] ss:$16 sps:$4 sm:$0xff]   ;;  %v593_v15 = vld [vmem:[%s859_s1 + $0xa8] ss:$16 sps:$4 sm:$0xff]  }
   0x6   :  { %v596_v16 = vld [vmem:[%s859_s1 + $0x8c] ss:$16 sps:$4 sm:$0xff]   ;;  %v586_v17 = vld [vmem:[%s859_s1 + $0x60] ss:$16 sps:$4 sm:$0xff]   ;;  %v588_v18 = vld [vmem:[%s859_s1 + $0x44] ss:$16 sps:$4 sm:$0xff]  }
   0x7   :  { %255 = vmatpush1.bf16.msra.mxu0 %v572_v4  ;;  %296 = vmatpush1.bf16.msra.mxu1 %v587_v11  ;;  %v599_v19 = vld [vmem:[%s859_s1 + $0x88] ss:$16 sps:$4 sm:$0xff]   ;;  %v602_v20 = vld [vmem:[%s859_s1 + $0x6c] ss:$16 sps:$4 sm:$0xff]   ;;  %v50_v21 = vld [vmem:[%s860_s0] sm:$0xff] }
   0x8   :  { %256 = vmatprep.subr.bf16.mxu0 %v573_v5  ;;  %297 = vmatprep.subr.bf16.mxu1 %v590_v14  ;;  %v51_v22 = vld [vmem:[%s860_s0 + $0x8] sm:$0xff]  ;;  %v592_v23 = vld [vmem:[%s859_s1 + $0x40] ss:$16 sps:$4 sm:$0xff]   ;;  %v469_v24 = vmul.f32 -1.442695, %v50_v21  ;;  %v53_v33 = vld [vmem:[%s860_s0 + $0x18] sm:$0xff] }
   0x9   :  { %v470_v25 = vmul.f32 -1.442695, %v51_v22  ;;  %v594_v26 = vld [vmem:[%s859_s1 + $0x24] ss:$16 sps:$4 sm:$0xff]   ;;  %v605_v27 = vld [vmem:[%s859_s1 + $0x68] ss:$16 sps:$4 sm:$0xff]  }
   0xa   :  { %615 = vpow2.f32 %v469_v24  ;;  %v606_v28 = vld [vmem:[%s859_s1 + $0x4c] ss:$16 sps:$4 sm:$0xff]   ;;  %v598_v29 = vld [vmem:[%s859_s1 + $0x20] ss:$16 sps:$4 sm:$0xff]   ;;  %v600_v30 = vld [vmem:[%s859_s1 + $0x4] ss:$16 sps:$4 sm:$0xff]  }
   0xb   :  { %257 = vmatpush1.bf16.msra.mxu0 %v575_v8  ;;  %298 = vmatpush1.bf16.msra.mxu1 %v593_v15  ;;  %617 = vpow2.f32 %v470_v25  ;;  %v608_v31 = vld [vmem:[%s859_s1 + $0x48] ss:$16 sps:$4 sm:$0xff]   ;;  %v609_v32 = vld [vmem:[%s859_s1 + $0x2c] ss:$16 sps:$4 sm:$0xff]   ;;  %v604_v34 = vld [vmem:[%s859_s1] ss:$16 sps:$4 sm:$0xff]  }
   0xc   :  { %258 = vmatprep.subr.bf16.mxu0 %v576_v9  ;;  %299 = vmatprep.subr.bf16.mxu1 %v596_v16  ;;  %v611_v35 = vld [vmem:[%s859_s1 + $0x28] ss:$16 sps:$4 sm:$0xff]   ;;  %v471_v36 = vmul.f32 -1.442695, %v53_v33  ;;  %v612_v37 = vld [vmem:[%s859_s1 + $0xc] ss:$16 sps:$4 sm:$0xff]  }
   0xd   :  { %v52_v38 = vld [vmem:[%s860_s0 + $0x10] sm:$0xff]  ;;  %v614_v39 = vld [vmem:[%s859_s1 + $0x8] ss:$16 sps:$4 sm:$0xff]   ;;  %v383_v60 = vld [vmem:[%s861_s2 + $0x60] sm:$0xff] }
   0xe   :  { %619 = vpow2.f32 %v471_v36  ;;  %v386_v57 = vld [vmem:[%s861_s2 + $0x78] sm:$0xff]  ;;  %v385_v58 = vld [vmem:[%s861_s2 + $0x70] sm:$0xff]  ;;  %v384_v59 = vld [vmem:[%s861_s2 + $0x68] sm:$0xff] }
   0xf   :  { %259 = vmatpush1.bf16.msra.mxu0 %v580_v12  ;;  %300 = vmatpush1.bf16.msra.mxu1 %v599_v19  ;;  %621 = vtanh.f32 %v52_v38  ;;  %v382_v61 = vld [vmem:[%s861_s2 + $0x58] sm:$0xff]  ;;  %v381_v62 = vld [vmem:[%s861_s2 + $0x50] sm:$0xff]  ;;  %v380_v63 = vld [vmem:[%s861_s2 + $0x48] sm:$0xff] }
  0x10   :  { %260 = vmatprep.subr.bf16.mxu0 %v582_v13  ;;  %301 = vmatprep.subr.bf16.mxu1 %v602_v20  ;;  %v379_v0 = vld [vmem:[%s861_s2 + $0x40] sm:$0xff]  ;;  %v378_v1 = vld [vmem:[%s861_s2 + $0x38] sm:$0xff]  ;;  %v377_v2 = vld [vmem:[%s861_s2 + $0x30] sm:$0xff] }
  0x11   :  { %v376_v3 = vld [vmem:[%s861_s2 + $0x28] sm:$0xff]  ;;  %v375_v4 = vld [vmem:[%s861_s2 + $0x20] sm:$0xff]  ;;  %v374_v5 = vld [vmem:[%s861_s2 + $0x18] sm:$0xff] }
  0x12   :  { %v373_v6 = vld [vmem:[%s861_s2 + $0x10] sm:$0xff]  ;;  %v372_v7 = vld [vmem:[%s861_s2 + $0x8] sm:$0xff]  ;;  %v371_v8 = vld [vmem:[%s861_s2] sm:$0xff] }
  0x13   :  { %261 = vmatpush1.bf16.msra.mxu0 %v586_v17  ;;  %302 = vmatpush1.bf16.msra.mxu1 %v605_v27  ;;  %v472_v9 = vld [vmem:[%s860_s0 + $0x20] sm:$0xff]  ;;  %v473_v11 = vld [vmem:[%s860_s0 + $0x28] sm:$0xff]  ;;  %v474_v24 = vld [vmem:[%s860_s0 + $0x30] sm:$0xff] }
  0x14   :  { %262 = vmatprep.subr.bf16.mxu0 %v588_v18  ;;  %303 = vmatprep.subr.bf16.mxu1 %v606_v28 }
  0x17   :  { %263 = vmatpush1.bf16.msra.mxu0 %v592_v23  ;;  %304 = vmatpush1.bf16.msra.mxu1 %v608_v31  ;;  %v616_v40 = vpop.eup %615  ;;  %v475_v23 = vld [vmem:[%s860_s0 + $0x38] sm:$0xff] }
  0x18   :  { %264 = vmatprep.subr.bf16.mxu0 %v594_v26  ;;  %305 = vmatprep.subr.bf16.mxu1 %v609_v32  ;;  %v618_v41 = vpop.eup %617  ;;  %v57_v42 = vadd.f32 1.0, %v616_v40 }
  0x19   :  { %v63_v43 = vadd.f32 1.0, %v618_v41 }
  0x1a   :  { %623 = vrcp.f32 %v57_v42 }
  0x1b   :  { %265 = vmatpush1.bf16.msra.mxu0 %v598_v29  ;;  %306 = vmatpush1.bf16.msra.mxu1 %v611_v35  ;;  %625 = vrcp.f32 %v63_v43  ;;  %v620_v44 = vpop.eup %619 }
  0x1c   :  { %266 = vmatprep.subr.bf16.mxu0 %v600_v30  ;;  %307 = vmatprep.subr.bf16.mxu1 %v612_v37  ;;  %v622_v45 = vpop.eup %621  ;;  %v70_v47 = vadd.f32 1.0, %v620_v44 }
  0x1e   :  { %627 = vrcp.f32 %v70_v47 }
  0x1f   :  { %267 = vmatpush1.bf16.msra.mxu0 %v604_v34  ;;  %308 = vmatpush1.bf16.msra.mxu1 %v614_v39 }
  0x20   :  { %529 = vmatprep.subr.mxu0 %v648_v56 }
  0x27   :  { %v624_v46 = vpop.eup %623 }
  0x28   :  { %v626_v48 = vpop.eup %625  ;;  %v74_v49 = vmul.f32 %v624_v46, %v622_v45 }
  0x29   :  { %v73_v50 = vmul.f32 0.0, %v626_v48 }
  0x2b   :  { %v783_v51 = vadd.f32 %v74_v49, %v73_v50  ;;  %v628_v52 = vpop.eup %627 }
  0x2d   :  { %629 = vtanh.f32 %v783_v51 }
  0x3a   :  { %v630_v53 = vpop.eup %629 }
  0x3b   :  { %v786_v54 = vmul.f32 %v630_v53, %v628_v52 }
  0x3d   :  { %v91_v55 = vpack.c.bf16 %v786_v54, %v786_v54  ;;  %v78_v40 = vrot.slane %v786_v54, 4 }
  0x3f   :  { %285 = vmatmul.mubr.bf16.vlgmr.msra.gmra.mxu0 %v91_v55  ;;  %326 = vmatmul.mubr.bf16.vlgmr.msra.gmra.mxu1 %v91_v55  ;;  %v79_v41 = vadd.f32 %v78_v40, %v786_v54  ;;  %v511_v54 = vld [vmem:[%s862_s3] ss:$0 sm:$0xff] }
  0x40   :  { %530 = vmatpush3.msra.mxu0 %v386_v57  ;;  %561 = vmatprep.mubr.msk.f32.mxu0 %vm649_vm0, %v648_v56 }
  0x41   :  { %531 = vmatprep.subr.mxu0 %v648_v56  ;;  %v80_v42 = vrot.slane %v79_v41, 2 }
  0x42   :  { %532 = vmatpush3.msra.mxu0 %v385_v58 }
  0x43   :  { %533 = vmatprep.subr.mxu0 %v648_v56  ;;  %v81_v45 = vadd.f32 %v80_v42, %v79_v41 }
  0x44   :  { %534 = vmatpush3.msra.mxu0 %v384_v59 }
  0x45   :  { %535 = vmatprep.subr.mxu0 %v648_v56  ;;  %v82_v48 = vrot.slane %v81_v45, 1 }
  0x46   :  { %536 = vmatpush3.msra.mxu0 %v383_v60 }
  0x47   :  { %537 = vmatprep.subr.mxu0 %v648_v56  ;;  %v83_v52 = vadd.f32 %v82_v48, %v81_v45 }
  0x48   :  { %538 = vmatpush3.msra.mxu0 %v382_v61 }
  0x49   :  { %539 = vmatprep.subr.mxu0 %v648_v56  ;;  %v85_v55 = vmul.f32 0.125, %v83_v52 }
  0x4a   :  { %540 = vmatpush3.msra.mxu0 %v381_v62 }
  0x4b   :  { %541 = vmatprep.subr.mxu0 %v648_v56 }
  0x4c   :  { %542 = vmatpush3.msra.mxu0 %v380_v63 }
  0x4d   :  { %543 = vmatprep.subr.mxu0 %v648_v56 }
  0x4e   :  { %544 = vmatpush3.msra.mxu0 %v379_v0 }
  0x4f   :  { %545 = vmatprep.subr.mxu0 %v648_v56 }
  0x50   :  { %546 = vmatpush3.msra.mxu0 %v378_v1 }
  0x51   :  { %547 = vmatprep.subr.mxu0 %v648_v56 }
  0x52   :  { %548 = vmatpush3.msra.mxu0 %v377_v2 }
  0x53   :  { %549 = vmatprep.subr.mxu0 %v648_v56 }
  0x54   :  { %550 = vmatpush3.msra.mxu0 %v376_v3 }
  0x55   :  { %551 = vmatprep.subr.mxu0 %v648_v56 }
  0x56   :  { %552 = vmatpush3.msra.mxu0 %v375_v4 }
  0x57   :  { %553 = vmatprep.subr.mxu0 %v648_v56 }
  0x58   :  { %554 = vmatpush3.msra.mxu0 %v374_v5 }
  0x59   :  { %555 = vmatprep.subr.mxu0 %v648_v56 }
  0x5a   :  { %556 = vmatpush3.msra.mxu0 %v373_v6 }
  0x5b   :  { %557 = vmatprep.subr.mxu0 %v648_v56 }
  0x5c   :  { %558 = vmatpush3.msra.mxu0 %v372_v7 }
  0x5d   :  { %559 = vmatprep.subr.mxu0 %v648_v56 }
  0x5e   :  { %560 = vmatpush3.msra.mxu0 %v371_v8 }
  0xff   :  { %v286_v10 = vpop.f32.mrf.mxu0  ;;  %v327_v12 = vpop.f32.mrf.mxu1 }
 0x100   :  { %v334_v13 = vadd.f32 %v472_v9, %v286_v10  ;;  %v336_v26 = vadd.f32 %v474_v24, %v327_v12 }
 0x101   :  { %v288_v14 = vpop.f32.mrf.mxu0  ;;  %v329_v15 = vpop.f32.mrf.mxu1 }
 0x102   :  { %v508_v16 = vmul.f32 -1.442695, %v334_v13  ;;  %v335_v17 = vadd.f32 %v473_v11, %v288_v14  ;;  %v337_v25 = vadd.f32 %v475_v23, %v329_v15 }
 0x103   :  { %v290_v18 = vpop.f32.mrf.mxu0  ;;  %v331_v19 = vpop.f32.mrf.mxu1 }
 0x104   :  { %631 = vpow2.f32 %v508_v16  ;;  %v509_v20 = vmul.f32 -1.442695, %v335_v17  ;;  %v510_v27 = vmul.f32 -1.442695, %v337_v25 }
 0x105   :  { %v291_v21 = vpop.f32.mrf.mxu0  ;;  %v332_v22 = vpop.f32.mrf.mxu1 }
 0x106   :  { %633 = vpow2.f32 %v509_v20 }
 0x107   :  { %635 = vtanh.f32 %v336_v26 }
 0x108   :  { %637 = vpow2.f32 %v510_v27 }
 0x111   :  { %v632_v28 = vpop.eup %631 }
 0x112   :  { %v341_v29 = vadd.f32 1.0, %v632_v28 }
 0x113   :  { %v634_v30 = vpop.eup %633 }
 0x114   :  { %639 = vrcp.f32 %v341_v29  ;;  %v347_v31 = vadd.f32 1.0, %v634_v30  ;;  %v636_v32 = vpop.eup %635 }
 0x115   :  { %v638_v33 = vpop.eup %637 }
 0x116   :  { %641 = vrcp.f32 %v347_v31  ;;  %v354_v36 = vadd.f32 1.0, %v638_v33 }
 0x118   :  { %643 = vrcp.f32 %v354_v36 }
 0x121   :  { %v640_v34 = vpop.eup %639 }
 0x122   :  { %v358_v38 = vmul.f32 %v640_v34, %v636_v32 }
 0x123   :  { %v642_v35 = vpop.eup %641 }
 0x124   :  { %v357_v37 = vmul.f32 %v642_v35, %v783_v51 }
 0x125   :  { %v644_v43 = vpop.eup %643 }
 0x126   :  { %v359_v39 = vadd.f32 %v358_v38, %v357_v37 }
 0x128   :  { %645 = vtanh.f32 %v359_v39 }
 0x135   :  { %v646_v44 = vpop.eup %645 }
 0x136   :  { %v361_v46 = vmul.f32 %v646_v44, %v644_v43 }
 0x138   :  { %v362_v47 = vrot.slane %v361_v46, 4 }
 0x13a   :  { %v363_v49 = vadd.f32 %v362_v47, %v361_v46 }
 0x13c   :  { %v364_v50 = vrot.slane %v363_v49, 2 }
 0x13e   :  { %v365_v53 = vadd.f32 %v364_v50, %v363_v49 }
 0x140   :  { %v366_v51 = vrot.slane %v365_v53, 1 }
 0x142   :  { %v367_v56 = vadd.f32 %v366_v51, %v365_v53 }
 0x144   :  { %v368_v57 = vmul.f32 0.125, %v367_v56 }
 0x146   :  { %v370_v58 = vsel %vm369_vm1, %v85_v55, %v368_v57 }
 0x147   :  { %562 = vmatmul.mubr.f32.vlgmr.msra.gmra.mxu0 %v370_v58 }
 0x207   :  { %v460_v59 = vpop.f32.mrf.mxu0 }
 0x208   :  { %v461_v60 = vadd.f32 %v511_v54, %v460_v59 }
 0x209   :  { %v563_v61 = vpop.f32.mrf.mxu0 }
 0x20a   :  { %464 = vst [vmem:[%s863_s4] sm:$0x3] %v461_v60 }

// kernel: forward.2
= control target key start
LH: loop header
LB: loop body
LE: loop exit
PB: predicated region body
PF: predicated region fallthrough
CT: control target
= control target key end

     0   :  { %s3161_s21 = smov 0   ;;  %s3163_s22 = smov 0   ;;  %s4211_s0 = inlined_call_operand.vmem [shape: bf16[27,4096], index: 0, kind: input, shape index: {}]   ;;  %s4212_s1 = inlined_call_operand.vmem [shape: bf16[128,27], index: 1, kind: input, shape index: {}]   ;;  %s4213_s2 = inlined_call_operand.vmem [shape: f32[128,1], index: 2, kind: input, shape index: {}]   ;;  %s4214_s3 = inlined_call_operand.vmem [shape: bf16[1024,4], index: 3, kind: input, shape index: {}]   ;;  %s4215_s4 = inlined_call_operand.vmem [shape: bf16[128,512], index: 4, kind: input, shape index: {}]   ;;  %s4216_s5 = inlined_call_operand.vmem [shape: f32[16,128,256], index: 5, kind: output, shape index: {0}]   ;;  %s4217_s6 = inlined_call_operand.vmem [shape: f32[4,4,512], index: 6, kind: output, shape index: {1}]  }
   0x1   :  { %s3165_s23 = smov 0  }
   0x2 LB: > { %s3177_s24 = sadd.s32 4294967295, %s3122_s23   ;;  %s3180_s25 = sadd.s32 1, %s3122_s23   ;;  %s3122_s23 = sphi %s3165_s23, %s4220_s23   ;;  %s3118_s22 = sphi %s3163_s22, %s4219_s22   ;;  %s3114_s21 = sphi %s3161_s21, %s4218_s21  }
   0x3   : > { %s21_s26 = ssub.s32 %s3122_s23, %s3180_s25  ;;  %s24_s27 = sadd.s32 1, %s3118_s22 }
   0x4   : > { %p22_p0 = scmp.eq.s32.totalorder %s21_s26, 0  ;;  %p31_p1 = scmp.ne.s32.totalorder %s3118_s22, %s3114_s21 }
   0x5   : > { %p32_p2 = scmp.eq.s32.totalorder %s3122_s23, 0  ;;  %p2527_p4 = scmp.ge.s32.totalorder %s3122_s23, 4 }
   0x6   : > { %s3189_s28 = scalar_select %p22_p0, %s3118_s22, %s24_s27  }
   0x7   : > { %p33_p3 = por %p32_p2, %p31_p1  ;;  %205 = sbr.rel (%p2527_p4) target bundleno = 24 (0x18), region = 32 }
   0xc   : > { %208 = sbr.rel (!%p33_p3) target bundleno = 24 (0x18), region = 36  ;;  %s210_s29 = sand.u32 (%p33_p3), 1, %s3118_s22  }
   0xd   : > { %s2796_s30 = sshll.u32 (%p33_p3), %s3122_s23, 5  ;;  %s2528_s7 = sshll.u32 (%p33_p3), %s210_s29, 7 }
   0xe   : > { %s3197_s10 = scalar_lea.vmem (%p33_p3), %s4211_s0, %s2796_s30  ;;  %s212_s11 = scalar_lea.vmem (%p33_p3), [#allocation2], %s2528_s7 }
   0xf   : > { %v228_v0 = vld [vmem:[%s3197_s10] sm:$0xff] (%p33_p3)  ;;  %v230_v1 = vld [vmem:[%s3197_s10 + $0x8] sm:$0xff] (%p33_p3)  ;;  %v232_v2 = vld [vmem:[%s3197_s10 + $0x10] sm:$0xff] (%p33_p3) }
  0x10   : > { %229 = vst [vmem:[%s212_s11] sm:$0xff] (%p33_p3), %v228_v0  ;;  %231 = vst [vmem:[%s212_s11 + $0x8] sm:$0xff] (%p33_p3), %v230_v1  ;;  %v234_v3 = vld [vmem:[%s3197_s10 + $0x18] sm:$0xff] (%p33_p3)  ;;  %v236_v4 = vld [vmem:[%s3197_s10 + $0x80] sm:$0xff] (%p33_p3) }
  0x11   : > { %233 = vst [vmem:[%s212_s11 + $0x10] sm:$0xff] %v232_v2  ;;  %v238_v5 = vld [vmem:[%s3197_s10 + $0x88] sm:$0xff]  ;;  %235 = vst [vmem:[%s212_s11 + $0x18] sm:$0xff] %v234_v3  ;;  %v240_v6 = vld [vmem:[%s3197_s10 + $0x90] sm:$0xff] }
  0x12   : > { %237 = vst [vmem:[%s212_s11 + $0x20] sm:$0xff] %v236_v4  ;;  %239 = vst [vmem:[%s212_s11 + $0x28] sm:$0xff] %v238_v5  ;;  %v242_v7 = vld [vmem:[%s3197_s10 + $0x98] sm:$0xff]  ;;  %v244_v8 = vld [vmem:[%s3197_s10 + $0x100] sm:$0xff] }
  0x13   : > { %241 = vst [vmem:[%s212_s11 + $0x30] sm:$0xff] %v240_v6  ;;  %243 = vst [vmem:[%s212_s11 + $0x38] sm:$0xff] %v242_v7  ;;  %v246_v9 = vld [vmem:[%s3197_s10 + $0x108] sm:$0xff]  ;;  %v248_v10 = vld [vmem:[%s3197_s10 + $0x110] sm:$0xff] }
  0x14   : > { %245 = vst [vmem:[%s212_s11 + $0x40] sm:$0xff] %v244_v8  ;;  %v250_v11 = vld [vmem:[%s3197_s10 + $0x118] sm:$0xff]  ;;  %247 = vst [vmem:[%s212_s11 + $0x48] sm:$0xff] %v246_v9  ;;  %v252_v12 = vld [vmem:[%s3197_s10 + $0x180] sm:$0xff] }
  0x15   : > { %249 = vst [vmem:[%s212_s11 + $0x50] sm:$0xff] %v248_v10  ;;  %251 = vst [vmem:[%s212_s11 + $0x58] sm:$0xff] %v250_v11  ;;  %v254_v13 = vld [vmem:[%s3197_s10 + $0x188] sm:$0xff]  ;;  %v256_v14 = vld [vmem:[%s3197_s10 + $0x190] sm:$0xff] }
  0x16   : > { %253 = vst [vmem:[%s212_s11 + $0x60] sm:$0xff] %v252_v12  ;;  %255 = vst [vmem:[%s212_s11 + $0x68] sm:$0xff] %v254_v13  ;;  %v258_v15 = vld [vmem:[%s3197_s10 + $0x198] sm:$0xff] }
  0x17   : > { %257 = vst [vmem:[%s212_s11 + $0x70] sm:$0xff] %v256_v14  ;;  %259 = vst [vmem:[%s212_s11 + $0x78] sm:$0xff] %v258_v15 }
  0x18 PF: > { %p2531_p5 = scmp.ge.s32.totalorder %s3122_s23, 1  ;;  %p264_p6 = scmp.lt.s32.totalorder %s3122_s23, 5 }
  0x1a   : > { %p265_p7 = pnand %p2531_p5, %p264_p6 }
  0x1b   : > { %s271_s14 = sand.u32 (!%p265_p7), 1, %s3114_s21   ;;  %s2533_s11 = sshll.u32 (!%p265_p7), %s3177_s24, 2 }
  0x1c   : > { %268 = sbr.rel (%p265_p7) target bundleno = 962 (0x3c2), region = 59  ;;  %s2532_s15 = sshll.u32 (!%p265_p7), %s271_s14, 7 }
  0x1d   : > { %s3232_s18 = scalar_lea.vmem (!%p265_p7), [#allocation2], %s2532_s15  ;;  %p308_p8 = scmp.lt.s32.totalorder (!%p265_p7), %s2533_s11, 15 }
  0x1e   : > { %p314_p9 = scmp.lt.s32.totalorder (!%p265_p7), %s3177_s24, 3 }
  0x21   : > { %v3220_v16 = vld [vmem:[%s4213_s2 + $0x10] sm:$0xff]  ;;  %vm585_vm0 = vcmask 1044480   ;;  %vm586_vm1 = vcmask 1045504   ;;  %v3124_v17 = vmov 0   ;;  %v3229_v18 = vld [vmem:[%s4213_s2 + $0x18] sm:$0xff]  ;;  %v3125_v19 = vmov 65535  }
  0x22   : > { %2972 = vset.pattern.permute.xlu1 %v3124_v17  ;;  %645 = vmatprep.mubr.bf16.mxu0 %v3124_v17  ;;  %v587_v20 = vsel %vm585_vm0, 4294967295, %v3125_v19  ;;  %v344_v21 = vld [vmem:[%s3232_s18 + $0x40] sm:$0xff]  ;;  %v345_v28 = vld [vmem:[%s3232_s18 + $0x48] sm:$0xff]  ;;  %v3266_v36 = vld [vmem:[%s4213_s2 + $0x38] sm:$0xff]  ;;  %vm560_vm2 = vcmask 220160   ;;  %s4222_s11 = smov (!%p308_p8, %s2533_s11), 15 }
  0x23   : > { %1942 = vperm.xlu1 %2972, %v3220_v16   ;;  %715 = vmatprep.mubr.bf16.mxu1 %v3124_v17  ;;  %v348_v22 = vld [vmem:[%s3232_s18 + $0x60] sm:$0x33]  ;;  %v3236_v23 = vsel %vm586_vm1, %v587_v20, 0  ;;  %v349_v29 = vld [vmem:[%s3232_s18 + $0x68] sm:$0x33]  ;;  %v347_v42 = vld [vmem:[%s3232_s18 + $0x58] sm:$0xff] }
  0x24   : > { %v336_v24 = vld [vmem:[%s3232_s18] sm:$0xff]  ;;  %2971 = vset.pattern.permute.xlu0 %v3124_v17  ;;  %v3240_v25 = vcombine.high %v344_v21, %v348_v22  ;;  %v3242_v26 = vcombine.low %v344_v21, %v348_v22  ;;  %v3254_v33 = vcombine.high %v345_v28, %v349_v29  ;;  %v3259_v34 = vld [vmem:[%s4213_s2 + $0x28] sm:$0xff]  ;;  %v3268_v37 = vcombine.low %v345_v28, %v349_v29  ;;  %v351_v43 = vld [vmem:[%s3232_s18 + $0x78] sm:$0x33]  ;;  %s2797_s12 = sshll.u32 %s4222_s11, 8  ;;  %s4224_s24 = smov (!%p314_p9, %s3177_s24), 3 }
  0x25   : > { %v340_v27 = vld [vmem:[%s3232_s18 + $0x20] sm:$0xff]  ;;  %v337_v40 = vld [vmem:[%s3232_s18 + $0x8] sm:$0xff]  ;;  %v346_v44 = vld [vmem:[%s3232_s18 + $0x50] sm:$0xff]  ;;  %v3302_v51 = vcombine.high %v347_v42, %v351_v43  ;;  %v3333_v59 = vcombine.low %v347_v42, %v351_v43  ;;  %s3774_s15 = scalar_lea.vmem %s4216_s5, %s2797_s12  ;;  %s2798_s10 = sshll.u32 %s4224_s24, 4 }
  0x26   : > { %v593_v30 = vand.u32 %v3240_v25, %v3236_v23  ;;  %v590_v31 = vand.u32 %v3242_v26, %v3236_v23  ;;  %v3252_v32 = vcombine.high %v336_v24, %v340_v27  ;;  %v3261_v35 = vcombine.low %v336_v24, %v340_v27  ;;  %v3275_v38 = vld [vmem:[%s4212_s1] sm:$0xff]   ;;  %v341_v41 = vld [vmem:[%s3232_s18 + $0x28] sm:$0xff]  ;;  %v350_v45 = vld [vmem:[%s3232_s18 + $0x70] sm:$0x33]  ;;  %s318_s13 = scalar_lea.vmem %s4217_s6, %s2798_s10 }
  0x27   : > { %1947 = vperm.xlu1 %2972, %v3229_v18   ;;  %v599_v39 = vand.u32 %v3254_v33, %v3236_v23  ;;  %v3289_v46 = vld [vmem:[%s4212_s1 + $0x38] sm:$0xff]   ;;  %v3291_v47 = vcombine.low %v346_v44, %v350_v45  ;;  %v3293_v48 = vcombine.high %v346_v44, %v350_v45  ;;  %v596_v49 = vand.u32 %v3268_v37, %v3236_v23  ;;  %v3307_v52 = vld [vmem:[%s4213_s2 + $0x48] sm:$0xff]  ;;  %v338_v56 = vld [vmem:[%s3232_s18 + $0x10] sm:$0xff] }
  0x28   : > { %625 = vmatprep.subr.bf16.mxu0 %v593_v30  ;;  %2941 = vmatprep.subr.bf16.mxu1 %v593_v30  ;;  %v3300_v50 = vcombine.high %v337_v40, %v341_v41  ;;  %v3317_v55 = vcombine.low %v337_v40, %v341_v41  ;;  %v3326_v57 = vld [vmem:[%s4213_s2 + $0x58] sm:$0xff]  ;;  %v3331_v58 = vld [vmem:[%s4212_s1 + $0x8] sm:$0xff]   ;;  %v611_v60 = vand.u32 %v3302_v51, %v3236_v23  ;;  %v342_v61 = vld [vmem:[%s3232_s18 + $0x30] sm:$0xff] }
  0x29   : > { %626 = vmatpush1.bf16.msra.mxu0 %v590_v31  ;;  %2943 = vmatpush1.bf16.msra.mxu1 %v590_v31  ;;  %v605_v53 = vand.u32 %v3293_v48, %v3236_v23  ;;  %v602_v54 = vand.u32 %v3291_v47, %v3236_v23  ;;  %v339_v62 = vld [vmem:[%s3232_s18 + $0x18] sm:$0xff]  ;;  %v3340_v63 = vcombine.high %v338_v56, %v342_v61  ;;  %v3351_v2 = vld [vmem:[%s4213_s2 + $0x68] sm:$0xff]  ;;  %v3382_v9 = vld [vmem:[%s4212_s1 + $0x10] sm:$0xff]  }
  0x2a   : > { %627 = vmatprep.subr.bf16.mxu0 %v3252_v32  ;;  %2942 = vmatprep.subr.bf16.mxu1 %v3252_v32  ;;  %v343_v0 = vld [vmem:[%s3232_s18 + $0x38] sm:$0xff]  ;;  %v608_v1 = vand.u32 %v3333_v59, %v3236_v23  ;;  %v3355_v4 = vcombine.low %v338_v56, %v342_v61  ;;  %v352_v10 = vld [vmem:[%s4213_s2] sm:$0xff]  ;;  %v353_v11 = vld [vmem:[%s4213_s2 + $0x8] sm:$0xff] }
  0x2b   : > { %1957 = vperm.xlu1 %2972, %v3259_v34   ;;  %v3353_v3 = vcombine.high %v339_v62, %v343_v0  ;;  %v2981_v5 = vld [vmem:[%s4214_s3 + $0x78] sm:$0xff]   ;;  %v3372_v7 = vcombine.low %v339_v62, %v343_v0  ;;  %v3413_v13 = vld [vmem:[%s4212_s1 + $0x20] sm:$0xff]   ;;  %v3428_v15 = vld [vmem:[%s4212_s1 + $0x28] sm:$0xff]  }
  0x2c   : > { %v3370_v6 = vld [vmem:[%s4213_s2 + $0x78] sm:$0xff]  ;;  %v356_v14 = vld [vmem:[%s4213_s2 + $0x20] sm:$0xff]  ;;  %v362_v20 = vld [vmem:[%s4213_s2 + $0x50] sm:$0xff] }
  0x2d   : > { %628 = vmatpush1.bf16.msra.mxu0 %v3261_v35  ;;  %2944 = vmatpush1.bf16.msra.mxu1 %v3261_v35  ;;  %v2983_v8 = vld [vmem:[%s4214_s3 + $0xf8] sm:$0xff]   ;;  %v360_v19 = vld [vmem:[%s4213_s2 + $0x40] sm:$0xff]  ;;  %v2985_v22 = vld [vmem:[%s4214_s3 + $0x70] sm:$0xff]  }
  0x2e   : > { %738 = vmatprep.subr.bf16.mxu1 %v599_v39  ;;  %851 = vmatprep.subr.bf16.mxu0 %v605_v53  ;;  %v3401_v12 = vld [vmem:[%s4212_s1 + $0x18] sm:$0xff]   ;;  %v2986_v24 = vld [vmem:[%s4214_s3 + $0x30] sm:$0xff]   ;;  %v2989_v27 = vld [vmem:[%s4214_s3 + $0x68] sm:$0xff]  }
  0x2f   : > { %1967 = vperm.xlu1 %2972, %v3266_v36   ;;  %v2982_v21 = vld [vmem:[%s4214_s3 + $0x38] sm:$0xff]   ;;  %v364_v28 = vld [vmem:[%s4213_s2 + $0x60] sm:$0xff]  ;;  %v2990_v29 = vld [vmem:[%s4214_s3 + $0x28] sm:$0xff]  }
  0x30   : > { %2562 = vmatmul.mubr.msk.bf16.vlgmr.msra.gmra.mxu0 %vm560_vm2, %v3275_v38  ;;  %2569 = vmatmul.mubr.msk.bf16.vlgmr.msra.gmra.mxu1 %vm560_vm2, %v3289_v46  ;;  %v2993_v30 = vld [vmem:[%s4214_s3 + $0x60] sm:$0xff]   ;;  %v366_v39 = vld [vmem:[%s4213_s2 + $0x70] sm:$0xff]  ;;  %v2996_v41 = vld [vmem:[%s4214_s3 + $0x18] sm:$0xff]  }
  0x31   : > { %739 = vmatpush1.bf16.msra.mxu1 %v596_v49  ;;  %655 = vmatprep.mubr.bf16.mxu0 %v3124_v17  ;;  %v2994_v31 = vld [vmem:[%s4214_s3 + $0x20] sm:$0xff]   ;;  %v2987_v40 = vld [vmem:[%s4214_s3 + $0xf0] sm:$0xff]   ;;  %v2991_v44 = vld [vmem:[%s4214_s3 + $0xe8] sm:$0xff]  }
  0x32   : > { %740 = vmatprep.subr.bf16.mxu1 %v3300_v50  ;;  %758 = vmatprep.mubr.bf16.mxu1 %v3124_v17  ;;  %v2999_v42 = vld [vmem:[%s4214_s3 + $0x50] sm:$0xff]   ;;  %v2992_v49 = vld [vmem:[%s4214_s3 + $0xa8] sm:$0xff]   ;;  %v2997_v53 = vld [vmem:[%s4214_s3 + $0xe0] sm:$0xff]  }
  0x33   : > { %1977 = vperm.xlu1 %2972, %v3307_v52   ;;  %852 = vmatpush1.bf16.msra.mxu0 %v602_v54  ;;  %v2988_v43 = vld [vmem:[%s4214_s3 + $0xb0] sm:$0xff]   ;;  %v3002_v54 = vld [vmem:[%s4214_s3 + $0x8] sm:$0xff]   ;;  %v3005_v56 = vld [vmem:[%s4214_s3 + $0x40] sm:$0xff]  }
  0x34   : > { %853 = vmatprep.subr.bf16.mxu0 %v3340_v63  ;;  %v3000_v45 = vld [vmem:[%s4214_s3 + $0x10] sm:$0xff]   ;;  %v3004_v61 = vld [vmem:[%s4214_s3 + $0x98] sm:$0xff]  }
  0x35   : > { %741 = vmatpush1.bf16.msra.mxu1 %v3317_v55  ;;  %v3007_v62 = vld [vmem:[%s4214_s3 + $0x178] sm:$0xff]   ;;  %v3008_v0 = vld [vmem:[%s4214_s3 + $0xd0] sm:$0xff]  }
  0x36   : > { %964 = vmatprep.subr.bf16.mxu1 %v611_v60  ;;  %v3006_v60 = vld [vmem:[%s4214_s3] sm:$0xff]  }
  0x37   : > { %1987 = vperm.xlu1 %2972, %v3326_v57   ;;  %854 = vmatpush1.bf16.msra.mxu0 %v3355_v4 }
  0x38   : > { %2563 = vmatmul.mubr.msk.bf16.gmra.mxu0 %vm560_vm2, %v3331_v58  ;;  %2570 = vmatmul.mubr.msk.bf16.vlgmr.msra.gmra.mxu1 %vm560_vm2, %v3275_v38 }
  0x39   : > { %665 = vmatprep.mubr.bf16.mxu0 %v3124_v17  ;;  %768 = vmatprep.mubr.bf16.mxu1 %v3124_v17 }
  0x3a   : > { %965 = vmatpush1.bf16.msra.mxu1 %v608_v1  ;;  %2799 = vmatprep.subr.bf16.mxu0 %v2981_v5  ;;  %v3010_v1 = vld [vmem:[%s4214_s3 + $0x90] sm:$0xff]   ;;  %v3015_v5 = vld [vmem:[%s4214_s3 + $0x88] sm:$0xff]  }
  0x3b   : > { %1997 = vperm.xlu1 %2972, %v3351_v2   ;;  %966 = vmatprep.subr.bf16.mxu1 %v3353_v3 }
  0x3e   : > { %967 = vmatpush1.bf16.msra.mxu1 %v3372_v7 }
  0x3f   : > { %2007 = vperm.xlu1 %2972, %v3370_v6   ;;  %2827 = vmatprep.subr.bf16.mxu1 %v2983_v8  ;;  %v3019_v8 = vld [vmem:[%s4214_s3 + $0x80] sm:$0xff]  }
  0x40   : > { %2564 = vmatmul.mubr.msk.bf16.gmra.mxu0 %vm560_vm2, %v3382_v9  ;;  %2571 = vmatmul.mubr.msk.bf16.gmra.mxu1 %vm560_vm2, %v3331_v58 }
  0x41   : > { %675 = vmatprep.mubr.bf16.mxu0 %v3124_v17  ;;  %778 = vmatprep.mubr.bf16.mxu1 %v3124_v17 }
  0x43   : > { %370 = vperm.xlu1 %2972, %v352_v10  }
  0x47   : > { %375 = vperm.xlu1 %2972, %v353_v11  }
  0x48   : > { %2565 = vmatmul.mubr.msk.bf16.gmra.mxu0 %vm560_vm2, %v3401_v12  ;;  %2572 = vmatmul.mubr.msk.bf16.gmra.mxu1 %vm560_vm2, %v3382_v9 }
  0x49   : > { %685 = vmatprep.mubr.bf16.mxu0 %v3124_v17  ;;  %788 = vmatprep.mubr.bf16.mxu1 %v3124_v17 }
  0x4b   : > { %380 = vperm.xlu1 %2972, %v3220_v16   ;;  %v358_v16 = vld [vmem:[%s4213_s2 + $0x30] sm:$0xff] }
  0x4f   : > { %385 = vperm.xlu1 %2972, %v3229_v18   ;;  %v3443_v18 = vld [vmem:[%s4212_s1 + $0x30] sm:$0xff]  }
  0x50   : > { %2566 = vmatmul.mubr.msk.bf16.gmra.mxu0 %vm560_vm2, %v3413_v13  ;;  %2573 = vmatmul.mubr.msk.bf16.gmra.mxu1 %vm560_vm2, %v3401_v12 }
  0x51   : > { %695 = vmatprep.mubr.bf16.mxu0 %v3124_v17  ;;  %798 = vmatprep.mubr.bf16.mxu1 %v3124_v17 }
  0x53   : > { %390 = vperm.xlu1 %2972, %v356_v14   ;;  %v3011_v14 = vld [vmem:[%s4214_s3 + $0x170] sm:$0xff]  }
  0x57   : > { %395 = vperm.xlu1 %2972, %v3259_v34   ;;  %v2995_v34 = vld [vmem:[%s4214_s3 + $0x58] sm:$0xff]  }
  0x58   : > { %2567 = vmatmul.mubr.msk.bf16.gmra.mxu0 %vm560_vm2, %v3428_v15  ;;  %2574 = vmatmul.mubr.msk.bf16.gmra.mxu1 %vm560_vm2, %v3413_v13 }
  0x59   : > { %705 = vmatprep.mubr.bf16.mxu0 %v3124_v17  ;;  %808 = vmatprep.mubr.bf16.mxu1 %v3124_v17 }
  0x5b   : > { %400 = vperm.xlu1 %2972, %v358_v16   ;;  %v3014_v16 = vld [vmem:[%s4214_s3 + $0x168] sm:$0xff]  }
  0x5f   : > { %405 = vperm.xlu1 %2972, %v3266_v36   ;;  %v2984_v36 = vld [vmem:[%s4214_s3 + $0xb8] sm:$0xff]  }
  0x60   : > { %2568 = vmatmul.mubr.msk.bf16.gmra.mxu0 %vm560_vm2, %v3443_v18  ;;  %2575 = vmatmul.mubr.msk.bf16.gmra.mxu1 %vm560_vm2, %v3428_v15 }
  0x61   : > { %818 = vmatprep.mubr.bf16.mxu1 %v3124_v17  ;;  %871 = vmatprep.mubr.bf16.mxu0 %v3124_v17 }
  0x63   : > { %410 = vperm.xlu1 %2972, %v360_v19   ;;  %v3018_v19 = vld [vmem:[%s4214_s3 + $0x160] sm:$0xff]  }
  0x67   : > { %415 = vperm.xlu1 %2972, %v3307_v52   ;;  %v3001_v52 = vld [vmem:[%s4214_s3 + $0x48] sm:$0xff]  }
  0x68   : > { %2576 = vmatmul.mubr.msk.bf16.gmra.mxu1 %vm560_vm2, %v3443_v18  ;;  %2578 = vmatmul.mubr.msk.bf16.vlgmr.msra.gmra.mxu0 %vm560_vm2, %v3275_v38 }
  0x69   : > { %828 = vmatprep.mubr.bf16.mxu1 %v3124_v17  ;;  %881 = vmatprep.mubr.bf16.mxu0 %v3124_v17 }
  0x6a   : > { %2800 = vmatpush3.bf16.msra.mxu0 %v2982_v21  ;;  %v3021_v21 = vld [vmem:[%s4214_s3 + $0x158] sm:$0xff]  }
  0x6b   : > { %420 = vperm.xlu1 %2972, %v362_v20   ;;  %2801 = vmatprep.subr.bf16.mxu0 %v2985_v22  ;;  %v3024_v22 = vld [vmem:[%s4214_s3 + $0x1b8] sm:$0xff]  }
  0x6e   : > { %2802 = vmatpush3.bf16.msra.mxu0 %v2986_v24 }
  0x6f   : > { %425 = vperm.xlu1 %2972, %v3326_v57   ;;  %2803 = vmatprep.subr.bf16.mxu0 %v2989_v27  ;;  %v2998_v57 = vld [vmem:[%s4214_s3 + $0xa0] sm:$0xff]   ;;  %v3027_v27 = vld [vmem:[%s4214_s3 + $0x110] sm:$0xff]  }
  0x70   : > { %2577 = vmatmul.mubr.msk.bf16.gmra.mxu1 %vm560_vm2, %v3289_v46  ;;  %2579 = vmatmul.mubr.msk.bf16.gmra.mxu0 %vm560_vm2, %v3331_v58 }
  0x71   : > { %891 = vmatprep.mubr.bf16.mxu0 %v3124_v17  ;;  %984 = vmatprep.mubr.bf16.mxu1 %v3124_v17 }
  0x72   : > { %2804 = vmatpush3.bf16.msra.mxu0 %v2990_v29  ;;  %v3029_v29 = vld [vmem:[%s4214_s3 + $0x148] sm:$0xff]  }
  0x73   : > { %430 = vperm.xlu1 %2972, %v364_v28   ;;  %2805 = vmatprep.subr.bf16.mxu0 %v2993_v30  ;;  %v3028_v28 = vld [vmem:[%s4214_s3 + $0x1b0] sm:$0xff]  }
  0x76   : > { %2806 = vmatpush3.bf16.msra.mxu0 %v2994_v31  ;;  %v3031_v31 = vld [vmem:[%s4214_s3 + $0x108] sm:$0xff]  }
  0x77   : > { %435 = vperm.xlu1 %2972, %v3351_v2   ;;  %2807 = vmatprep.subr.bf16.mxu0 %v2995_v34  ;;  %v3013_v2 = vld [vmem:[%s4214_s3 + $0xc8] sm:$0xff]  }
  0x78   : > { %2580 = vmatmul.mubr.msk.bf16.gmra.mxu0 %vm560_vm2, %v3382_v9  ;;  %2586 = vmatmul.mubr.msk.bf16.vlgmr.msra.gmra.mxu1 %vm560_vm2, %v3275_v38  ;;  %v3032_v34 = vld [vmem:[%s4214_s3 + $0x1a8] sm:$0xff]  }
  0x79   : > { %901 = vmatprep.mubr.bf16.mxu0 %v3124_v17  ;;  %994 = vmatprep.mubr.bf16.mxu1 %v3124_v17 }
  0x7a   : > { %2828 = vmatpush3.bf16.msra.mxu1 %v2984_v36  ;;  %2808 = vmatpush3.bf16.msra.mxu0 %v2996_v41  ;;  %v3033_v36 = vld [vmem:[%s4214_s3 + $0x140] sm:$0xff]  }
  0x7b   : > { %440 = vperm.xlu1 %2972, %v366_v39   ;;  %2829 = vmatprep.subr.bf16.mxu1 %v2987_v40  ;;  %v3035_v40 = vld [vmem:[%s4214_s3 + $0x100] sm:$0xff]  }
  0x7c   : > { %2809 = vmatprep.subr.bf16.mxu0 %v2999_v42  ;;  %v3036_v41 = vld [vmem:[%s4214_s3 + $0x1a0] sm:$0xff]   ;;  %v3037_v42 = vld [vmem:[%s4214_s3 + $0x1d8] sm:$0xff]  }
  0x7e   : > { %2830 = vmatpush3.bf16.msra.mxu1 %v2988_v43  ;;  %2810 = vmatpush3.bf16.msra.mxu0 %v3000_v45  ;;  %v3038_v43 = vld [vmem:[%s4214_s3 + $0x198] sm:$0xff]  }
  0x7f   : > { %445 = vperm.xlu1 %2972, %v3370_v6   ;;  %2831 = vmatprep.subr.bf16.mxu1 %v2991_v44  ;;  %v3017_v6 = vld [vmem:[%s4214_s3 + $0xc0] sm:$0xff]   ;;  %v3039_v44 = vld [vmem:[%s4214_s3 + $0x1d0] sm:$0xff]  }
  0x80   : > { %2581 = vmatmul.mubr.msk.bf16.gmra.mxu0 %vm560_vm2, %v3401_v12  ;;  %2587 = vmatmul.mubr.msk.bf16.gmra.mxu1 %vm560_vm2, %v3331_v58  ;;  %v3003_v58 = vld [vmem:[%s4214_s3 + $0xd8] sm:$0xff]  }
  0x81   : > { %911 = vmatprep.mubr.bf16.mxu0 %v3124_v17  ;;  %1004 = vmatprep.mubr.bf16.mxu1 %v3124_v17 }
  0x82   : > { %2832 = vmatpush3.bf16.msra.mxu1 %v2992_v49  ;;  %2811 = vmatprep.subr.bf16.mxu0 %v3001_v52  ;;  %v3041_v49 = vld [vmem:[%s4214_s3 + $0x1c8] sm:$0xff]  }
  0x83   : > { %2833 = vmatprep.subr.bf16.mxu1 %v2997_v53  ;;  %2812 = vmatpush3.bf16.msra.mxu0 %v3002_v54  ;;  %v3043_v53 = vld [vmem:[%s4214_s3 + $0x1c0] sm:$0xff]  }
  0x84   : > { %2813 = vmatprep.subr.bf16.mxu0 %v3005_v56  ;;  %v3044_v54 = vld [vmem:[%s4214_s3 + $0x180] sm:$0xff]  }
  0x86   : > { %2834 = vmatpush3.bf16.msra.mxu1 %v2998_v57 }
  0x87   : > { %2835 = vmatprep.subr.bf16.mxu1 %v3003_v58  ;;  %2814 = vmatpush3.bf16.msra.mxu0 %v3006_v60 }
  0x88   : > { %2582 = vmatmul.mubr.msk.bf16.gmra.mxu0 %vm560_vm2, %v3413_v13  ;;  %2588 = vmatmul.mubr.msk.bf16.gmra.mxu1 %vm560_vm2, %v3382_v9  ;;  %v3022_v9 = vld [vmem:[%s4214_s3 + $0x1f8] sm:$0xff]  }
  0x89   : > { %921 = vmatprep.mubr.bf16.mxu0 %v3124_v17  ;;  %1014 = vmatprep.mubr.bf16.mxu1 %v3124_v17 }
  0x8a   : > { %2836 = vmatpush3.bf16.msra.mxu1 %v3004_v61  ;;  %2855 = vmatprep.subr.bf16.mxu0 %v3007_v62 }
  0x8b   : > { %2837 = vmatprep.subr.bf16.mxu1 %v3008_v0 }
  0x8e   : > { %2838 = vmatpush3.bf16.msra.mxu1 %v3010_v1 }
  0x8f   : > { %2839 = vmatprep.subr.bf16.mxu1 %v3013_v2 }
  0x90   : > { %2583 = vmatmul.mubr.msk.bf16.gmra.mxu0 %vm560_vm2, %v3428_v15  ;;  %2589 = vmatmul.mubr.msk.bf16.gmra.mxu1 %vm560_vm2, %v3401_v12 }
  0x91   : > { %931 = vmatprep.mubr.bf16.mxu0 %v3124_v17  ;;  %1024 = vmatprep.mubr.bf16.mxu1 %v3124_v17 }
  0x92   : > { %2840 = vmatpush3.bf16.msra.mxu1 %v3015_v5 }
  0x93   : > { %2841 = vmatprep.subr.bf16.mxu1 %v3017_v6 }
  0x96   : > { %2842 = vmatpush3.bf16.msra.mxu1 %v3019_v8 }
  0x97   : > { %2883 = vmatprep.subr.bf16.mxu1 %v3022_v9 }
  0x98   : > { %2584 = vmatmul.mubr.msk.bf16.gmra.mxu0 %vm560_vm2, %v3443_v18  ;;  %2590 = vmatmul.mubr.msk.bf16.gmra.mxu1 %vm560_vm2, %v3413_v13  ;;  %v3009_v13 = vld [vmem:[%s4214_s3 + $0x138] sm:$0xff]  }
  0x99   : > { %941 = vmatprep.mubr.bf16.mxu0 %v3124_v17  ;;  %1034 = vmatprep.mubr.bf16.mxu1 %v3124_v17 }
  0x9e   : > { %v3606_v10 = vpop.permute.xlu1 %1942 }
  0xa0   : > { %2585 = vmatmul.mubr.msk.bf16.gmra.mxu0 %vm560_vm2, %v3289_v46  ;;  %2591 = vmatmul.mubr.msk.bf16.gmra.mxu1 %vm560_vm2, %v3428_v15 }
  0xa1   : > { %1044 = vmatprep.mubr.bf16.mxu1 %v3124_v17  ;;  %1748 = vmatprep.mubr.bf16.mxu0 %v3252_v32  ;;  %v3012_v32 = vld [vmem:[%s4214_s3 + $0x130] sm:$0xff]  }
  0xa2   : > { %v3612_v11 = vpop.permute.xlu1 %1947 }
  0xa6   : > { %v3616_v12 = vpop.permute.xlu1 %1957 }
  0xa8   : > { %2592 = vmatmul.mubr.msk.bf16.gmra.mxu1 %vm560_vm2, %v3443_v18  ;;  %1749 = vmatmul.mubr.bf16.vlgmr.msra.gmra.mxu0 %v3261_v35  ;;  %v3016_v35 = vld [vmem:[%s4214_s3 + $0x128] sm:$0xff]  }
  0xa9   : > { %2856 = vmatpush3.bf16.msra.mxu0 %v3009_v13  ;;  %1054 = vmatprep.mubr.bf16.mxu1 %v3124_v17 }
  0xaa   : > { %v3627_v15 = vpop.permute.xlu1 %1967  ;;  %2857 = vmatprep.subr.bf16.mxu0 %v3011_v14  ;;  %1756 = vmatprep.mubr.bf16.mxu0 %v3240_v25  ;;  %v3020_v25 = vld [vmem:[%s4214_s3 + $0x120] sm:$0xff]  }
  0xad   : > { %2858 = vmatpush3.bf16.msra.mxu0 %v3012_v32 }
  0xae   : > { %v3637_v18 = vpop.permute.xlu1 %1977  ;;  %2859 = vmatprep.subr.bf16.mxu0 %v3014_v16 }
  0xb0   : > { %2593 = vmatmul.mubr.msk.bf16.gmra.mxu1 %vm560_vm2, %v3289_v46  ;;  %1757 = vmatmul.mubr.bf16.gmra.mxu0 %v3242_v26  ;;  %v3023_v26 = vld [vmem:[%s4214_s3 + $0x118] sm:$0xff]  }
  0xb1   : > { %2860 = vmatpush3.bf16.msra.mxu0 %v3016_v35  ;;  %1797 = vmatprep.mubr.bf16.mxu1 %v3300_v50  ;;  %v3025_v50 = vld [vmem:[%s4214_s3 + $0x150] sm:$0xff]  }
  0xb2   : > { %v3648_v20 = vpop.permute.xlu1 %1987  ;;  %2861 = vmatprep.subr.bf16.mxu0 %v3018_v19  ;;  %1846 = vmatprep.mubr.bf16.mxu0 %v3340_v63  ;;  %v3026_v63 = vld [vmem:[%s4214_s3 + $0x1f0] sm:$0xff]  }
  0xb5   : > { %2862 = vmatpush3.bf16.msra.mxu0 %v3020_v25 }
  0xb6   : > { %v3658_v46 = vpop.permute.xlu1 %1997  ;;  %2863 = vmatprep.subr.bf16.mxu0 %v3021_v21 }
  0xb8   : > { %1798 = vmatmul.mubr.bf16.vlgmr.msra.gmra.mxu1 %v3317_v55  ;;  %v3030_v55 = vld [vmem:[%s4214_s3 + $0x1e8] sm:$0xff]  }
  0xb9   : > { %2864 = vmatpush3.bf16.msra.mxu0 %v3023_v26  ;;  %2884 = vmatpush3.bf16.msra.mxu1 %v3024_v22 }
  0xba   : > { %v3673_v24 = vpop.permute.xlu1 %2007  ;;  %2865 = vmatprep.subr.bf16.mxu0 %v3025_v50  ;;  %2885 = vmatprep.subr.bf16.mxu1 %v3026_v63 }
  0xbb   : > { %1805 = vmatprep.mubr.bf16.mxu1 %v3254_v33  ;;  %v3034_v33 = vld [vmem:[%s4214_s3 + $0x1e0] sm:$0xff]  }
  0xbd   : > { %2866 = vmatpush3.bf16.msra.mxu0 %v3027_v27  ;;  %2886 = vmatpush3.bf16.msra.mxu1 %v3028_v28 }
  0xbe   : > { %v3688_v30 = vpop.permute.xlu1 %370  ;;  %2867 = vmatprep.subr.bf16.mxu0 %v3029_v29  ;;  %2887 = vmatprep.subr.bf16.mxu1 %v3030_v55 }
  0xc0   : > { %1806 = vmatmul.mubr.bf16.gmra.mxu1 %v3268_v37 }
  0xc1   : > { %2868 = vmatpush3.bf16.msra.mxu0 %v3031_v31  ;;  %2888 = vmatpush3.bf16.msra.mxu1 %v3032_v34 }
  0xc2   : > { %v3703_v39 = vpop.permute.xlu1 %375  ;;  %2869 = vmatprep.subr.bf16.mxu0 %v3033_v36  ;;  %2889 = vmatprep.subr.bf16.mxu1 %v3034_v33 }
  0xc3   : > { %1895 = vmatprep.mubr.bf16.mxu1 %v3353_v3  ;;  %v3040_v3 = vld [vmem:[%s4214_s3 + $0x190] sm:$0xff]  }
  0xc5   : > { %2870 = vmatpush3.bf16.msra.mxu0 %v3035_v40  ;;  %2890 = vmatpush3.bf16.msra.mxu1 %v3036_v41 }
  0xc6   : > { %v3715_v37 = vpop.permute.xlu1 %380  ;;  %2891 = vmatprep.subr.bf16.mxu1 %v3037_v42 }
  0xc8   : > { %1847 = vmatmul.mubr.bf16.vlgmr.msra.gmra.mxu0 %v3355_v4  ;;  %v3042_v4 = vld [vmem:[%s4214_s3 + $0x188] sm:$0xff]  }
  0xc9   : > { %2892 = vmatpush3.bf16.msra.mxu1 %v3038_v43  ;;  %1854 = vmatprep.mubr.bf16.mxu0 %v3293_v48 }
  0xca   : > { %v3724_v45 = vpop.permute.xlu1 %385  ;;  %2893 = vmatprep.subr.bf16.mxu1 %v3039_v44 }
  0xcd   : > { %2894 = vmatpush3.bf16.msra.mxu1 %v3040_v3 }
  0xce   : > { %v3733_v52 = vpop.permute.xlu1 %390  ;;  %2895 = vmatprep.subr.bf16.mxu1 %v3041_v49 }
  0xd0   : > { %1855 = vmatmul.mubr.bf16.gmra.mxu0 %v3291_v47 }
  0xd1   : > { %2896 = vmatpush3.bf16.msra.mxu1 %v3042_v4  ;;  %2925 = vmatprep.mubr.msk.bf16.mxu0 %vm560_vm2, %v3275_v38 }
  0xd2   : > { %v3742_v48 = vpop.permute.xlu1 %395  ;;  %2897 = vmatprep.subr.bf16.mxu1 %v3043_v53 }
  0xd5   : > { %2898 = vmatpush3.bf16.msra.mxu1 %v3044_v54 }
  0xd6   : > { %v3749_v56 = vpop.permute.xlu1 %400 }
  0xd8   : > { %1896 = vmatmul.mubr.bf16.vlgmr.msra.gmra.mxu1 %v3372_v7 }
  0xd9   : > { %1903 = vmatprep.mubr.bf16.mxu1 %v3302_v51 }
  0xda   : > { %v3752_v57 = vpop.permute.xlu1 %405 }
  0xde   : > { %v3755_v47 = vpop.permute.xlu1 %410 }
  0xe0   : > { %1904 = vmatmul.mubr.bf16.gmra.mxu1 %v3333_v59 }
  0xe1   : > { %2367 = vmatprep.mubr.bf16.mxu1 %v3124_v17 }
  0xe2   : > { %v3758_v58 = vpop.permute.xlu1 %415 }
  0xe6   : > { %v3762_v38 = vpop.permute.xlu1 %420 }
  0xea   : > { %v3764_v60 = vpop.permute.xlu1 %425 }
  0xee   : > { %v3766_v7 = vpop.permute.xlu1 %430 }
  0xf0   : > { %v717_v61 = vpop.f32.mrf.mxu1  ;;  %v647_v51 = vpop.f32.mrf.mxu0 }
  0xf1   : > { %v648_v59 = vadd.f32 %v647_v51, %v3688_v30 }
  0xf2   : > { %v3768_v62 = vpop.permute.xlu1 %435  ;;  %v719_v0 = vpop.f32.mrf.mxu1 }
  0xf3   : > { %v649_v1 = vpop.f32.mrf.mxu0  ;;  %1065 = vst [vmem:[%s3774_s15] sm:$0xff] %v648_v59 }
  0xf4   : > { %v650_v2 = vadd.f32 %v649_v1, %v3688_v30  ;;  %v721_v5 = vpop.f32.mrf.mxu1 }
  0xf5   : > { %v651_v6 = vpop.f32.mrf.mxu0 }
  0xf6   : > { %v3778_v8 = vpop.permute.xlu1 %440  ;;  %1066 = vst [vmem:[%s3774_s15 + $0x8] sm:$0xff] %v650_v2  ;;  %v652_v9 = vadd.f32 %v651_v6, %v3703_v39  ;;  %v723_v32 = vpop.f32.mrf.mxu1 }
  0xf7   : > { %v718_v13 = vadd.f32 %v717_v61, %v3778_v8  ;;  %v720_v14 = vadd.f32 %v719_v0, %v3778_v8  ;;  %v653_v16 = vpop.f32.mrf.mxu0 }
  0xf8   : > { %1067 = vst [vmem:[%s3774_s15 + $0x10] sm:$0xff] %v652_v9  ;;  %v654_v35 = vadd.f32 %v653_v16, %v3703_v39  ;;  %v760_v19 = vpop.f32.mrf.mxu1 }
  0xf9   : > { %1093 = vst [vmem:[%s3774_s15 + $0xe0] sm:$0xff] %v718_v13  ;;  %1094 = vst [vmem:[%s3774_s15 + $0xe8] sm:$0xff] %v720_v14  ;;  %v657_v25 = vpop.f32.mrf.mxu0  ;;  %v761_v21 = vadd.f32 %v760_v19, %v3688_v30 }
  0xfa   : > { %v3789_v26 = vpop.permute.xlu1 %445  ;;  %1068 = vst [vmem:[%s3774_s15 + $0x18] sm:$0xff] %v654_v35  ;;  %v658_v22 = vadd.f32 %v657_v25, %v3715_v37  ;;  %v762_v27 = vpop.f32.mrf.mxu1 }
  0xfb   : > { %v722_v50 = vadd.f32 %v721_v5, %v3789_v26  ;;  %v724_v63 = vadd.f32 %v723_v32, %v3789_v26  ;;  %v659_v28 = vpop.f32.mrf.mxu0  ;;  %2594 = vst [vmem:[%s3774_s15 + $0x100] sm:$0xff] %v761_v21  ;;  %v763_v29 = vadd.f32 %v762_v27, %v3688_v30 }
  0xfc   : > { %1069 = vst [vmem:[%s3774_s15 + $0x20] sm:$0xff] %v658_v22  ;;  %v660_v55 = vadd.f32 %v659_v28, %v3715_v37  ;;  %v764_v31 = vpop.f32.mrf.mxu1 }
  0xfd   : > { %1095 = vst [vmem:[%s3774_s15 + $0xf0] sm:$0xff] %v722_v50  ;;  %1096 = vst [vmem:[%s3774_s15 + $0xf8] sm:$0xff] %v724_v63  ;;  %v661_v34 = vpop.f32.mrf.mxu0  ;;  %v765_v36 = vadd.f32 %v764_v31, %v3703_v39 }
  0xfe   : > { %2595 = vst [vmem:[%s3774_s15 + $0x108] sm:$0xff] %v763_v29  ;;  %1070 = vst [vmem:[%s3774_s15 + $0x28] sm:$0xff] %v660_v55  ;;  %v662_v33 = vadd.f32 %v661_v34, %v3724_v45  ;;  %v766_v40 = vpop.f32.mrf.mxu1 }
  0xff   : > { %v663_v41 = vpop.f32.mrf.mxu0  ;;  %2596 = vst [vmem:[%s3774_s15 + $0x110] sm:$0xff] %v765_v36  ;;  %v767_v42 = vadd.f32 %v766_v40, %v3703_v39 }
 0x100   : > { %1071 = vst [vmem:[%s3774_s15 + $0x30] sm:$0xff] %v662_v33  ;;  %v664_v43 = vadd.f32 %v663_v41, %v3724_v45  ;;  %v770_v44 = vpop.f32.mrf.mxu1 }
 0x101   : > { %v667_v3 = vpop.f32.mrf.mxu0  ;;  %2597 = vst [vmem:[%s3774_s15 + $0x118] sm:$0xff] %v767_v42  ;;  %v771_v49 = vadd.f32 %v770_v44, %v3715_v37 }
 0x102   : > { %1072 = vst [vmem:[%s3774_s15 + $0x38] sm:$0xff] %v664_v43  ;;  %v668_v4 = vadd.f32 %v667_v3, %v3733_v52  ;;  %v772_v53 = vpop.f32.mrf.mxu1 }
 0x103   : > { %v669_v54 = vpop.f32.mrf.mxu0  ;;  %2598 = vst [vmem:[%s3774_s15 + $0x120] sm:$0xff] %v771_v49  ;;  %v773_v61 = vadd.f32 %v772_v53, %v3715_v37 }
 0x104   : > { %1073 = vst [vmem:[%s3774_s15 + $0x40] sm:$0xff] %v668_v4  ;;  %v670_v51 = vadd.f32 %v669_v54, %v3733_v52  ;;  %v774_v59 = vpop.f32.mrf.mxu1 }
 0x105   : > { %v671_v0 = vpop.f32.mrf.mxu0  ;;  %2599 = vst [vmem:[%s3774_s15 + $0x128] sm:$0xff] %v773_v61  ;;  %v775_v1 = vadd.f32 %v774_v59, %v3724_v45 }
 0x106   : > { %1074 = vst [vmem:[%s3774_s15 + $0x48] sm:$0xff] %v670_v51  ;;  %v672_v2 = vadd.f32 %v671_v0, %v3742_v48  ;;  %v776_v5 = vpop.f32.mrf.mxu1 }
 0x107   : > { %v673_v6 = vpop.f32.mrf.mxu0  ;;  %2600 = vst [vmem:[%s3774_s15 + $0x130] sm:$0xff] %v775_v1  ;;  %v777_v9 = vadd.f32 %v776_v5, %v3724_v45 }
 0x108   : > { %1075 = vst [vmem:[%s3774_s15 + $0x50] sm:$0xff] %v672_v2  ;;  %v674_v13 = vadd.f32 %v673_v6, %v3742_v48  ;;  %v780_v14 = vpop.f32.mrf.mxu1 }
 0x109   : > { %v677_v32 = vpop.f32.mrf.mxu0  ;;  %2601 = vst [vmem:[%s3774_s15 + $0x138] sm:$0xff] %v777_v9  ;;  %v781_v16 = vadd.f32 %v780_v14, %v3733_v52 }
 0x10a   : > { %1076 = vst [vmem:[%s3774_s15 + $0x58] sm:$0xff] %v674_v13  ;;  %v678_v35 = vadd.f32 %v677_v32, %v3749_v56  ;;  %v782_v19 = vpop.f32.mrf.mxu1 }
 0x10b   : > { %v679_v25 = vpop.f32.mrf.mxu0  ;;  %2602 = vst [vmem:[%s3774_s15 + $0x140] sm:$0xff] %v781_v16  ;;  %v783_v21 = vadd.f32 %v782_v19, %v3733_v52 }
 0x10c   : > { %1077 = vst [vmem:[%s3774_s15 + $0x60] sm:$0xff] %v678_v35  ;;  %v680_v22 = vadd.f32 %v679_v25, %v3749_v56  ;;  %v784_v50 = vpop.f32.mrf.mxu1 }
 0x10d   : > { %v681_v63 = vpop.f32.mrf.mxu0  ;;  %2603 = vst [vmem:[%s3774_s15 + $0x148] sm:$0xff] %v783_v21  ;;  %v785_v27 = vadd.f32 %v784_v50, %v3742_v48 }
 0x10e   : > { %1078 = vst [vmem:[%s3774_s15 + $0x68] sm:$0xff] %v680_v22  ;;  %v682_v28 = vadd.f32 %v681_v63, %v3752_v57  ;;  %v786_v29 = vpop.f32.mrf.mxu1 }
 0x10f   : > { %v683_v55 = vpop.f32.mrf.mxu0  ;;  %2604 = vst [vmem:[%s3774_s15 + $0x150] sm:$0xff] %v785_v27  ;;  %v787_v31 = vadd.f32 %v786_v29, %v3742_v48 }
 0x110   : > { %1079 = vst [vmem:[%s3774_s15 + $0x70] sm:$0xff] %v682_v28  ;;  %v684_v34 = vadd.f32 %v683_v55, %v3752_v57  ;;  %v790_v36 = vpop.f32.mrf.mxu1 }
 0x111   : > { %v687_v33 = vpop.f32.mrf.mxu0  ;;  %2605 = vst [vmem:[%s3774_s15 + $0x158] sm:$0xff] %v787_v31  ;;  %v791_v40 = vadd.f32 %v790_v36, %v3749_v56 }
 0x112   : > { %1080 = vst [vmem:[%s3774_s15 + $0x78] sm:$0xff] %v684_v34  ;;  %v688_v41 = vadd.f32 %v687_v33, %v3755_v47  ;;  %v792_v42 = vpop.f32.mrf.mxu1 }
 0x113   : > { %v689_v43 = vpop.f32.mrf.mxu0  ;;  %2606 = vst [vmem:[%s3774_s15 + $0x160] sm:$0xff] %v791_v40  ;;  %v793_v44 = vadd.f32 %v792_v42, %v3749_v56 }
 0x114   : > { %1081 = vst [vmem:[%s3774_s15 + $0x80] sm:$0xff] %v688_v41  ;;  %v690_v3 = vadd.f32 %v689_v43, %v3755_v47  ;;  %v794_v49 = vpop.f32.mrf.mxu1 }
 0x115   : > { %v691_v4 = vpop.f32.mrf.mxu0  ;;  %2607 = vst [vmem:[%s3774_s15 + $0x168] sm:$0xff] %v793_v44  ;;  %v795_v53 = vadd.f32 %v794_v49, %v3752_v57 }
 0x116   : > { %1082 = vst [vmem:[%s3774_s15 + $0x88] sm:$0xff] %v690_v3  ;;  %v692_v54 = vadd.f32 %v691_v4, %v3758_v58  ;;  %v796_v61 = vpop.f32.mrf.mxu1 }
 0x117   : > { %v693_v51 = vpop.f32.mrf.mxu0  ;;  %2608 = vst [vmem:[%s3774_s15 + $0x170] sm:$0xff] %v795_v53  ;;  %v797_v59 = vadd.f32 %v796_v61, %v3752_v57 }
 0x118   : > { %1083 = vst [vmem:[%s3774_s15 + $0x90] sm:$0xff] %v692_v54  ;;  %v694_v0 = vadd.f32 %v693_v51, %v3758_v58  ;;  %v800_v1 = vpop.f32.mrf.mxu1 }
 0x119   : > { %v697_v2 = vpop.f32.mrf.mxu0  ;;  %2609 = vst [vmem:[%s3774_s15 + $0x178] sm:$0xff] %v797_v59  ;;  %v801_v5 = vadd.f32 %v800_v1, %v3755_v47 }
 0x11a   : > { %1084 = vst [vmem:[%s3774_s15 + $0x98] sm:$0xff] %v694_v0  ;;  %v698_v6 = vadd.f32 %v697_v2, %v3762_v38  ;;  %v802_v9 = vpop.f32.mrf.mxu1 }
 0x11b   : > { %v699_v13 = vpop.f32.mrf.mxu0  ;;  %2610 = vst [vmem:[%s3774_s15 + $0x180] sm:$0xff] %v801_v5  ;;  %v803_v14 = vadd.f32 %v802_v9, %v3755_v47 }
 0x11c   : > { %1085 = vst [vmem:[%s3774_s15 + $0xa0] sm:$0xff] %v698_v6  ;;  %v700_v32 = vadd.f32 %v699_v13, %v3762_v38  ;;  %v804_v16 = vpop.f32.mrf.mxu1 }
 0x11d   : > { %v701_v35 = vpop.f32.mrf.mxu0  ;;  %2611 = vst [vmem:[%s3774_s15 + $0x188] sm:$0xff] %v803_v14  ;;  %v805_v19 = vadd.f32 %v804_v16, %v3758_v58 }
 0x11e   : > { %1086 = vst [vmem:[%s3774_s15 + $0xa8] sm:$0xff] %v700_v32  ;;  %v702_v25 = vadd.f32 %v701_v35, %v3764_v60  ;;  %v806_v21 = vpop.f32.mrf.mxu1 }
 0x11f   : > { %v703_v22 = vpop.f32.mrf.mxu0  ;;  %2612 = vst [vmem:[%s3774_s15 + $0x190] sm:$0xff] %v805_v19  ;;  %v807_v50 = vadd.f32 %v806_v21, %v3758_v58 }
 0x120   : > { %1087 = vst [vmem:[%s3774_s15 + $0xb0] sm:$0xff] %v702_v25  ;;  %v704_v63 = vadd.f32 %v703_v22, %v3764_v60  ;;  %v810_v27 = vpop.f32.mrf.mxu1 }
 0x121   : > { %v707_v28 = vpop.f32.mrf.mxu0  ;;  %2613 = vst [vmem:[%s3774_s15 + $0x198] sm:$0xff] %v807_v50  ;;  %v811_v29 = vadd.f32 %v810_v27, %v3762_v38 }
 0x122   : > { %1088 = vst [vmem:[%s3774_s15 + $0xb8] sm:$0xff] %v704_v63  ;;  %v708_v55 = vadd.f32 %v707_v28, %v3766_v7  ;;  %v812_v31 = vpop.f32.mrf.mxu1 }
 0x123   : > { %v709_v34 = vpop.f32.mrf.mxu0  ;;  %2614 = vst [vmem:[%s3774_s15 + $0x1a0] sm:$0xff] %v811_v29  ;;  %v813_v36 = vadd.f32 %v812_v31, %v3762_v38 }
 0x124   : > { %1089 = vst [vmem:[%s3774_s15 + $0xc0] sm:$0xff] %v708_v55  ;;  %v710_v33 = vadd.f32 %v709_v34, %v3766_v7  ;;  %v814_v40 = vpop.f32.mrf.mxu1 }
 0x125   : > { %v711_v41 = vpop.f32.mrf.mxu0  ;;  %2615 = vst [vmem:[%s3774_s15 + $0x1a8] sm:$0xff] %v813_v36  ;;  %v815_v42 = vadd.f32 %v814_v40, %v3764_v60 }
 0x126   : > { %1090 = vst [vmem:[%s3774_s15 + $0xc8] sm:$0xff] %v710_v33  ;;  %v712_v43 = vadd.f32 %v711_v41, %v3768_v62  ;;  %v816_v44 = vpop.f32.mrf.mxu1 }
 0x127   : > { %v713_v3 = vpop.f32.mrf.mxu0  ;;  %2616 = vst [vmem:[%s3774_s15 + $0x1b0] sm:$0xff] %v815_v42  ;;  %v817_v49 = vadd.f32 %v816_v44, %v3764_v60 }
 0x128   : > { %1091 = vst [vmem:[%s3774_s15 + $0xd0] sm:$0xff] %v712_v43  ;;  %v714_v4 = vadd.f32 %v713_v3, %v3768_v62  ;;  %v820_v53 = vpop.f32.mrf.mxu1 }
 0x129   : > { %v873_v54 = vpop.f32.mrf.mxu0  ;;  %2617 = vst [vmem:[%s3774_s15 + $0x1b8] sm:$0xff] %v817_v49  ;;  %v821_v61 = vadd.f32 %v820_v53, %v3766_v7 }
 0x12a   : > { %1092 = vst [vmem:[%s3774_s15 + $0xd8] sm:$0xff] %v714_v4  ;;  %v874_v51 = vadd.f32 %v873_v54, %v3688_v30  ;;  %v822_v59 = vpop.f32.mrf.mxu1 }
 0x12b   : > { %v875_v0 = vpop.f32.mrf.mxu0  ;;  %2618 = vst [vmem:[%s3774_s15 + $0x1c0] sm:$0xff] %v821_v61  ;;  %v823_v1 = vadd.f32 %v822_v59, %v3766_v7 }
 0x12c   : > { %2626 = vst [vmem:[%s3774_s15 + $0x200] sm:$0xff] %v874_v51  ;;  %v876_v2 = vadd.f32 %v875_v0, %v3688_v30  ;;  %v824_v5 = vpop.f32.mrf.mxu1 }
 0x12d   : > { %v877_v6 = vpop.f32.mrf.mxu0  ;;  %2619 = vst [vmem:[%s3774_s15 + $0x1c8] sm:$0xff] %v823_v1  ;;  %v825_v9 = vadd.f32 %v824_v5, %v3768_v62 }
 0x12e   : > { %2627 = vst [vmem:[%s3774_s15 + $0x208] sm:$0xff] %v876_v2  ;;  %v878_v13 = vadd.f32 %v877_v6, %v3703_v39  ;;  %v826_v14 = vpop.f32.mrf.mxu1 }
 0x12f   : > { %v879_v32 = vpop.f32.mrf.mxu0  ;;  %2620 = vst [vmem:[%s3774_s15 + $0x1d0] sm:$0xff] %v825_v9  ;;  %v827_v16 = vadd.f32 %v826_v14, %v3768_v62 }
 0x130   : > { %2628 = vst [vmem:[%s3774_s15 + $0x210] sm:$0xff] %v878_v13  ;;  %v880_v35 = vadd.f32 %v879_v32, %v3703_v39  ;;  %v830_v19 = vpop.f32.mrf.mxu1 }
 0x131   : > { %v883_v25 = vpop.f32.mrf.mxu0  ;;  %2621 = vst [vmem:[%s3774_s15 + $0x1d8] sm:$0xff] %v827_v16  ;;  %v831_v21 = vadd.f32 %v830_v19, %v3778_v8 }
 0x132   : > { %2629 = vst [vmem:[%s3774_s15 + $0x218] sm:$0xff] %v880_v35  ;;  %v884_v22 = vadd.f32 %v883_v25, %v3715_v37  ;;  %v832_v50 = vpop.f32.mrf.mxu1 }
 0x133   : > { %v885_v63 = vpop.f32.mrf.mxu0  ;;  %2622 = vst [vmem:[%s3774_s15 + $0x1e0] sm:$0xff] %v831_v21  ;;  %v833_v27 = vadd.f32 %v832_v50, %v3778_v8 }
 0x134   : > { %2630 = vst [vmem:[%s3774_s15 + $0x220] sm:$0xff] %v884_v22  ;;  %v886_v28 = vadd.f32 %v885_v63, %v3715_v37  ;;  %v834_v29 = vpop.f32.mrf.mxu1 }
 0x135   : > { %v887_v55 = vpop.f32.mrf.mxu0  ;;  %2623 = vst [vmem:[%s3774_s15 + $0x1e8] sm:$0xff] %v833_v27  ;;  %v835_v31 = vadd.f32 %v834_v29, %v3789_v26 }
 0x136   : > { %2631 = vst [vmem:[%s3774_s15 + $0x228] sm:$0xff] %v886_v28  ;;  %v888_v34 = vadd.f32 %v887_v55, %v3724_v45  ;;  %v836_v36 = vpop.f32.mrf.mxu1 }
 0x137   : > { %v889_v33 = vpop.f32.mrf.mxu0  ;;  %2624 = vst [vmem:[%s3774_s15 + $0x1f0] sm:$0xff] %v835_v31  ;;  %v837_v40 = vadd.f32 %v836_v36, %v3789_v26 }
 0x138   : > { %2632 = vst [vmem:[%s3774_s15 + $0x230] sm:$0xff] %v888_v34  ;;  %v890_v41 = vadd.f32 %v889_v33, %v3724_v45  ;;  %v986_v42 = vpop.f32.mrf.mxu1 }
 0x139   : > { %v893_v43 = vpop.f32.mrf.mxu0  ;;  %2625 = vst [vmem:[%s3774_s15 + $0x1f8] sm:$0xff] %v837_v40  ;;  %v987_v44 = vadd.f32 %v986_v42, %v3688_v30 }
 0x13a   : > { %2633 = vst [vmem:[%s3774_s15 + $0x238] sm:$0xff] %v890_v41  ;;  %v894_v3 = vadd.f32 %v893_v43, %v3733_v52  ;;  %v988_v49 = vpop.f32.mrf.mxu1 }
 0x13b   : > { %v895_v4 = vpop.f32.mrf.mxu0  ;;  %2658 = vst [vmem:[%s3774_s15 + $0x300] sm:$0xff] %v987_v44  ;;  %v989_v53 = vadd.f32 %v988_v49, %v3688_v30 }
 0x13c   : > { %2634 = vst [vmem:[%s3774_s15 + $0x240] sm:$0xff] %v894_v3  ;;  %v896_v54 = vadd.f32 %v895_v4, %v3733_v52  ;;  %v990_v61 = vpop.f32.mrf.mxu1  ;;  %v1914_v4 = vld [vmem:[%s4213_s2] sm:$0xff] }
 0x13d   : > { %v897_v51 = vpop.f32.mrf.mxu0  ;;  %2659 = vst [vmem:[%s3774_s15 + $0x308] sm:$0xff] %v989_v53  ;;  %v991_v59 = vadd.f32 %v990_v61, %v3703_v39  ;;  %1932 = vperm.xlu0 %2971, %v1914_v4  }
 0x13e   : > { %2635 = vst [vmem:[%s3774_s15 + $0x248] sm:$0xff] %v896_v54  ;;  %v898_v0 = vadd.f32 %v897_v51, %v3742_v48  ;;  %v992_v1 = vpop.f32.mrf.mxu1 }
 0x13f   : > { %v899_v2 = vpop.f32.mrf.mxu0  ;;  %2660 = vst [vmem:[%s3774_s15 + $0x310] sm:$0xff] %v991_v59  ;;  %v993_v30 = vadd.f32 %v992_v1, %v3703_v39 }
 0x140   : > { %2636 = vst [vmem:[%s3774_s15 + $0x250] sm:$0xff] %v898_v0  ;;  %v900_v5 = vadd.f32 %v899_v2, %v3742_v48  ;;  %v996_v6 = vpop.f32.mrf.mxu1 }
 0x141   : > { %v903_v9 = vpop.f32.mrf.mxu0  ;;  %2661 = vst [vmem:[%s3774_s15 + $0x318] sm:$0xff] %v993_v30  ;;  %v997_v13 = vadd.f32 %v996_v6, %v3715_v37 }
 0x142   : > { %2637 = vst [vmem:[%s3774_s15 + $0x258] sm:$0xff] %v900_v5  ;;  %v904_v14 = vadd.f32 %v903_v9, %v3749_v56  ;;  %v998_v32 = vpop.f32.mrf.mxu1 }
 0x143   : > { %v905_v16 = vpop.f32.mrf.mxu0  ;;  %2662 = vst [vmem:[%s3774_s15 + $0x320] sm:$0xff] %v997_v13  ;;  %v999_v39 = vadd.f32 %v998_v32, %v3715_v37  ;;  %v1918_v13 = vld [vmem:[%s4213_s2 + $0x20] sm:$0xff] }
 0x144   : > { %2638 = vst [vmem:[%s3774_s15 + $0x260] sm:$0xff] %v904_v14  ;;  %v906_v35 = vadd.f32 %v905_v16, %v3749_v56  ;;  %v1000_v19 = vpop.f32.mrf.mxu1 }
 0x145   : > { %v907_v25 = vpop.f32.mrf.mxu0  ;;  %2663 = vst [vmem:[%s3774_s15 + $0x328] sm:$0xff] %v999_v39  ;;  %v1001_v21 = vadd.f32 %v1000_v19, %v3724_v45 }
 0x146   : > { %2639 = vst [vmem:[%s3774_s15 + $0x268] sm:$0xff] %v906_v35  ;;  %v908_v22 = vadd.f32 %v907_v25, %v3752_v57  ;;  %v1002_v50 = vpop.f32.mrf.mxu1 }
 0x147   : > { %v909_v63 = vpop.f32.mrf.mxu0  ;;  %2664 = vst [vmem:[%s3774_s15 + $0x330] sm:$0xff] %v1001_v21  ;;  %v1003_v37 = vadd.f32 %v1002_v50, %v3724_v45  ;;  %v1920_v21 = vld [vmem:[%s4213_s2 + $0x30] sm:$0xff] }
 0x148   : > { %2640 = vst [vmem:[%s3774_s15 + $0x270] sm:$0xff] %v908_v22  ;;  %v910_v27 = vadd.f32 %v909_v63, %v3752_v57  ;;  %v1006_v28 = vpop.f32.mrf.mxu1 }
 0x149   : > { %v913_v29 = vpop.f32.mrf.mxu0  ;;  %2665 = vst [vmem:[%s3774_s15 + $0x338] sm:$0xff] %v1003_v37  ;;  %v1007_v55 = vadd.f32 %v1006_v28, %v3733_v52 }
 0x14a   : > { %2641 = vst [vmem:[%s3774_s15 + $0x278] sm:$0xff] %v910_v27  ;;  %v914_v31 = vadd.f32 %v913_v29, %v3755_v47  ;;  %v1008_v34 = vpop.f32.mrf.mxu1 }
 0x14b   : > { %v915_v36 = vpop.f32.mrf.mxu0  ;;  %2666 = vst [vmem:[%s3774_s15 + $0x340] sm:$0xff] %v1007_v55  ;;  %v1009_v45 = vadd.f32 %v1008_v34, %v3733_v52  ;;  %v1922_v55 = vld [vmem:[%s4213_s2 + $0x40] sm:$0xff] }
 0x14c   : > { %2642 = vst [vmem:[%s3774_s15 + $0x280] sm:$0xff] %v914_v31  ;;  %v916_v33 = vadd.f32 %v915_v36, %v3755_v47  ;;  %v1010_v40 = vpop.f32.mrf.mxu1 }
 0x14d   : > { %v917_v41 = vpop.f32.mrf.mxu0  ;;  %2667 = vst [vmem:[%s3774_s15 + $0x348] sm:$0xff] %v1009_v45  ;;  %v1011_v42 = vadd.f32 %v1010_v40, %v3742_v48 }
 0x14e   : > { %2643 = vst [vmem:[%s3774_s15 + $0x288] sm:$0xff] %v916_v33  ;;  %v918_v43 = vadd.f32 %v917_v41, %v3758_v58  ;;  %v1012_v44 = vpop.f32.mrf.mxu1 }
 0x14f   : > { %v919_v3 = vpop.f32.mrf.mxu0  ;;  %2668 = vst [vmem:[%s3774_s15 + $0x350] sm:$0xff] %v1011_v42  ;;  %v1013_v49 = vadd.f32 %v1012_v44, %v3742_v48  ;;  %v1915_v48 = vld [vmem:[%s4213_s2 + $0x8] sm:$0xff]  ;;  %v1924_v42 = vld [vmem:[%s4213_s2 + $0x50] sm:$0xff] }
 0x150   : > { %2644 = vst [vmem:[%s3774_s15 + $0x290] sm:$0xff] %v918_v43  ;;  %v920_v52 = vadd.f32 %v919_v3, %v3758_v58  ;;  %v1016_v53 = vpop.f32.mrf.mxu1  ;;  %1937 = vperm.xlu0 %2971, %v1915_v48  }
 0x151   : > { %v923_v54 = vpop.f32.mrf.mxu0  ;;  %2669 = vst [vmem:[%s3774_s15 + $0x358] sm:$0xff] %v1013_v49  ;;  %v1017_v61 = vadd.f32 %v1016_v53, %v3749_v56 }
 0x152   : > { %2645 = vst [vmem:[%s3774_s15 + $0x298] sm:$0xff] %v920_v52  ;;  %v924_v51 = vadd.f32 %v923_v54, %v3762_v38  ;;  %v1018_v59 = vpop.f32.mrf.mxu1  ;;  %v1926_v54 = vld [vmem:[%s4213_s2 + $0x60] sm:$0xff] }
 0x153   : > { %v925_v0 = vpop.f32.mrf.mxu0  ;;  %2670 = vst [vmem:[%s3774_s15 + $0x360] sm:$0xff] %v1017_v61  ;;  %v1019_v1 = vadd.f32 %v1018_v59, %v3749_v56 }
 0x154   : > { %2646 = vst [vmem:[%s3774_s15 + $0x2a0] sm:$0xff] %v924_v51  ;;  %v926_v2 = vadd.f32 %v925_v0, %v3762_v38  ;;  %v1020_v30 = vpop.f32.mrf.mxu1  ;;  %1952 = vperm.xlu0 %2971, %v1918_v13  }
 0x155   : > { %v927_v5 = vpop.f32.mrf.mxu0  ;;  %2671 = vst [vmem:[%s3774_s15 + $0x368] sm:$0xff] %v1019_v1  ;;  %v1021_v6 = vadd.f32 %v1020_v30, %v3752_v57  ;;  %v1928_v1 = vld [vmem:[%s4213_s2 + $0x70] sm:$0xff] }
 0x156   : > { %2647 = vst [vmem:[%s3774_s15 + $0x2a8] sm:$0xff] %v926_v2  ;;  %v928_v9 = vadd.f32 %v927_v5, %v3764_v60  ;;  %v1022_v14 = vpop.f32.mrf.mxu1 }
 0x157   : > { %v929_v56 = vpop.f32.mrf.mxu0  ;;  %2672 = vst [vmem:[%s3774_s15 + $0x370] sm:$0xff] %v1021_v6  ;;  %v1023_v32 = vadd.f32 %v1022_v14, %v3752_v57 }
 0x158   : > { %2648 = vst [vmem:[%s3774_s15 + $0x2b0] sm:$0xff] %v928_v9  ;;  %v930_v16 = vadd.f32 %v929_v56, %v3764_v60  ;;  %v1026_v39 = vpop.f32.mrf.mxu1  ;;  %1962 = vperm.xlu0 %2971, %v1920_v21  }
 0x159   : > { %v933_v35 = vpop.f32.mrf.mxu0  ;;  %2673 = vst [vmem:[%s3774_s15 + $0x378] sm:$0xff] %v1023_v32  ;;  %v1027_v19 = vadd.f32 %v1026_v39, %v3755_v47 }
 0x15a   : > { %2649 = vst [vmem:[%s3774_s15 + $0x2b8] sm:$0xff] %v930_v16  ;;  %v934_v25 = vadd.f32 %v933_v35, %v3766_v7  ;;  %v1028_v22 = vpop.f32.mrf.mxu1 }
 0x15b   : > { %v935_v57 = vpop.f32.mrf.mxu0  ;;  %2674 = vst [vmem:[%s3774_s15 + $0x380] sm:$0xff] %v1027_v19  ;;  %v1029_v50 = vadd.f32 %v1028_v22, %v3755_v47 }
 0x15c   : > { %2650 = vst [vmem:[%s3774_s15 + $0x2c0] sm:$0xff] %v934_v25  ;;  %v936_v63 = vadd.f32 %v935_v57, %v3766_v7  ;;  %v1030_v37 = vpop.f32.mrf.mxu1  ;;  %1972 = vperm.xlu0 %2971, %v1922_v55  }
 0x15d   : > { %v937_v27 = vpop.f32.mrf.mxu0  ;;  %2675 = vst [vmem:[%s3774_s15 + $0x388] sm:$0xff] %v1029_v50  ;;  %v1031_v28 = vadd.f32 %v1030_v37, %v3758_v58 }
 0x15e   : > { %2651 = vst [vmem:[%s3774_s15 + $0x2c8] sm:$0xff] %v936_v63  ;;  %v938_v29 = vadd.f32 %v937_v27, %v3768_v62  ;;  %v1032_v31 = vpop.f32.mrf.mxu1 }
 0x15f   : > { %v939_v47 = vpop.f32.mrf.mxu0  ;;  %2676 = vst [vmem:[%s3774_s15 + $0x390] sm:$0xff] %v1031_v28  ;;  %v1033_v34 = vadd.f32 %v1032_v31, %v3758_v58 }
 0x160   : > { %2652 = vst [vmem:[%s3774_s15 + $0x2d0] sm:$0xff] %v938_v29  ;;  %v940_v36 = vadd.f32 %v939_v47, %v3768_v62  ;;  %v1036_v45 = vpop.f32.mrf.mxu1  ;;  %1982 = vperm.xlu0 %2971, %v1924_v42  }
 0x161   : > { %v943_v33 = vpop.f32.mrf.mxu0  ;;  %2677 = vst [vmem:[%s3774_s15 + $0x398] sm:$0xff] %v1033_v34  ;;  %v1037_v40 = vadd.f32 %v1036_v45, %v3762_v38 }
 0x162   : > { %2653 = vst [vmem:[%s3774_s15 + $0x2d8] sm:$0xff] %v940_v36  ;;  %v944_v41 = vadd.f32 %v943_v33, %v3778_v8  ;;  %v1038_v43 = vpop.f32.mrf.mxu1 }
 0x163   : > { %v945_v58 = vpop.f32.mrf.mxu0  ;;  %2678 = vst [vmem:[%s3774_s15 + $0x3a0] sm:$0xff] %v1037_v40  ;;  %v1039_v44 = vadd.f32 %v1038_v43, %v3762_v38 }
 0x164   : > { %2654 = vst [vmem:[%s3774_s15 + $0x2e0] sm:$0xff] %v944_v41  ;;  %v946_v3 = vadd.f32 %v945_v58, %v3778_v8  ;;  %v1040_v49 = vpop.f32.mrf.mxu1  ;;  %1992 = vperm.xlu0 %2971, %v1926_v54  }
 0x165   : > { %v947_v52 = vpop.f32.mrf.mxu0  ;;  %2679 = vst [vmem:[%s3774_s15 + $0x3a8] sm:$0xff] %v1039_v44  ;;  %v1041_v4 = vadd.f32 %v1040_v49, %v3764_v60 }
 0x166   : > { %2655 = vst [vmem:[%s3774_s15 + $0x2e8] sm:$0xff] %v946_v3  ;;  %v948_v53 = vadd.f32 %v947_v52, %v3789_v26  ;;  %v1042_v38 = vpop.f32.mrf.mxu1 }
 0x167   : > { %v949_v61 = vpop.f32.mrf.mxu0  ;;  %2680 = vst [vmem:[%s3774_s15 + $0x3b0] sm:$0xff] %v1041_v4  ;;  %v1043_v51 = vadd.f32 %v1042_v38, %v3764_v60 }
 0x168   : > { %2656 = vst [vmem:[%s3774_s15 + $0x2f0] sm:$0xff] %v948_v53  ;;  %v950_v48 = vadd.f32 %v949_v61, %v3789_v26  ;;  %v1046_v59 = vpop.f32.mrf.mxu1  ;;  %2002 = vperm.xlu0 %2971, %v1928_v1  }
 0x169   : > { %2681 = vst [vmem:[%s3774_s15 + $0x3b8] sm:$0xff] %v1043_v51  ;;  %v1047_v0 = vadd.f32 %v1046_v59, %v3766_v7  ;;  %v4044_v30 = vpop.f32.mrf.mxu0 }
 0x16a   : > { %2657 = vst [vmem:[%s3774_s15 + $0x2f8] sm:$0xff] %v950_v48  ;;  %v1048_v2 = vpop.f32.mrf.mxu1 }
 0x16b   : > { %2682 = vst [vmem:[%s3774_s15 + $0x3c0] sm:$0xff] %v1047_v0  ;;  %v1049_v60 = vadd.f32 %v1048_v2, %v3766_v7  ;;  %v2816_v13 = vpop.f32.mrf.mxu0 }
 0x16c   : > { %v1050_v5 = vpop.f32.mrf.mxu1 }
 0x16d   : > { %2683 = vst [vmem:[%s3774_s15 + $0x3c8] sm:$0xff] %v1049_v60  ;;  %v1051_v6 = vadd.f32 %v1050_v5, %v3768_v62  ;;  %v2818_v39 = vpop.f32.mrf.mxu0 }
 0x16e   : > { %v1052_v9 = vpop.f32.mrf.mxu1 }
 0x16f   : > { %2684 = vst [vmem:[%s3774_s15 + $0x3d0] sm:$0xff] %v1051_v6  ;;  %v1053_v14 = vadd.f32 %v1052_v9, %v3768_v62  ;;  %v2819_v21 = vpop.f32.mrf.mxu0  ;;  %v2817_v9 = vadd.f32 %v2816_v13, %v4044_v30  ;;  %v3093_v13 = vld [vmem:[%s4212_s1 + $0x8] sm:$0xff]  }
 0x170   : > { %v1056_v56 = vpop.f32.mrf.mxu1  ;;  %v2820_v59 = vadd.f32 %v2819_v21, %v2818_v39 }
 0x171   : > { %2685 = vst [vmem:[%s3774_s15 + $0x3d8] sm:$0xff] %v1053_v14  ;;  %v1057_v32 = vadd.f32 %v1056_v56, %v3778_v8  ;;  %v2821_v62 = vpop.f32.mrf.mxu0 }
 0x172   : > { %v1058_v16 = vpop.f32.mrf.mxu1 }
 0x173   : > { %2686 = vst [vmem:[%s3774_s15 + $0x3e0] sm:$0xff] %v1057_v32  ;;  %v1059_v7 = vadd.f32 %v1058_v16, %v3778_v8  ;;  %v2822_v50 = vpop.f32.mrf.mxu0 }
 0x174   : > { %v1060_v35 = vpop.f32.mrf.mxu1  ;;  %v2823_v52 = vadd.f32 %v2822_v50, %v2821_v62 }
 0x175   : > { %2687 = vst [vmem:[%s3774_s15 + $0x3e8] sm:$0xff] %v1059_v7  ;;  %v1061_v19 = vadd.f32 %v1060_v35, %v3789_v26  ;;  %v2824_v37 = vpop.f32.mrf.mxu0 }
 0x176   : > { %v1062_v25 = vpop.f32.mrf.mxu1 }
 0x177   : > { %2688 = vst [vmem:[%s3774_s15 + $0x3f0] sm:$0xff] %v1061_v19  ;;  %v1063_v22 = vadd.f32 %v1062_v25, %v3789_v26  ;;  %v2825_v28 = vpop.f32.mrf.mxu0 }
 0x178   : > { %v2843_v57 = vpop.f32.mrf.mxu1  ;;  %v2826_v4 = vadd.f32 %v2825_v28, %v2824_v37  ;;  %v3094_v28 = vld [vmem:[%s4212_s1 + $0x10] sm:$0xff]  }
 0x179   : > { %2689 = vst [vmem:[%s3774_s15 + $0x3f8] sm:$0xff] %v1063_v22 }
 0x17a   : > { %v2844_v63 = vpop.f32.mrf.mxu1 }
 0x17b   : > { %v2845_v0 = vadd.f32 %v2844_v63, %v2843_v57 }
 0x17c   : > { %v2846_v27 = vpop.f32.mrf.mxu1 }
 0x17d   : > { %v1800_v25 = vadd.f32 %v2845_v0, %v2817_v9  ;;  %v3083_v0 = vld [vmem:[%s4215_s4 + $0x24] ss:$16 sps:$4 sm:$0xff]   ;;  %v3087_v9 = vld [vmem:[%s4215_s4] ss:$16 sps:$4 sm:$0xff]  }
 0x17e   : > { %v2847_v29 = vpop.f32.mrf.mxu1 }
 0x17f   : > { %v2848_v38 = vadd.f32 %v2847_v29, %v2846_v27  ;;  %v3096_v29 = vld [vmem:[%s4212_s1 + $0x20] sm:$0xff]  }
 0x180   : > { %v2849_v8 = vpop.f32.mrf.mxu1 }
 0x181   : > { %v1803_v14 = vadd.f32 %v2848_v38, %v2820_v59  ;;  %v3072_v38 = vld [vmem:[%s4215_s4 + $0x68] ss:$16 sps:$4 sm:$0xff]  }
 0x182   : > { %v2850_v34 = vpop.f32.mrf.mxu1  ;;  %v3078_v59 = vld [vmem:[%s4215_s4 + $0x48] ss:$16 sps:$4 sm:$0xff]  }
 0x183   : > { %v2851_v53 = vadd.f32 %v2850_v34, %v2849_v8  ;;  %v3098_v8 = vld [vmem:[%s4212_s1 + $0x30] sm:$0xff]  }
 0x184   : > { %v2852_v45 = vpop.f32.mrf.mxu1  ;;  %v3047_v34 = vld [vmem:[%s4215_s4 + $0xe4] ss:$16 sps:$4 sm:$0xff]  }
 0x185   : > { %v1808_v2 = vadd.f32 %v2851_v53, %v2823_v52  ;;  %2335 = vmatprep.subr.bf16.mxu1 %v3047_v34  ;;  %v3066_v52 = vld [vmem:[%s4215_s4 + $0x88] ss:$16 sps:$4 sm:$0xff]   ;;  %v3074_v53 = vld [vmem:[%s4215_s4 + $0x6c] ss:$16 sps:$4 sm:$0xff]  }
 0x186   : > { %v2853_v40 = vpop.f32.mrf.mxu1 }
 0x187   : > { %v2854_v54 = vadd.f32 %v2853_v40, %v2852_v45  ;;  %v3050_v45 = vld [vmem:[%s4215_s4 + $0xec] ss:$16 sps:$4 sm:$0xff]   ;;  %v3051_v40 = vld [vmem:[%s4215_s4 + $0xc0] ss:$16 sps:$4 sm:$0xff]  }
 0x188   : > { %v2871_v55 = vpop.f32.mrf.mxu0 }
 0x189   : > { %v1811_v60 = vadd.f32 %v2854_v54, %v2826_v4  ;;  %v3071_v4 = vld [vmem:[%s4215_s4 + $0x64] ss:$16 sps:$4 sm:$0xff]   ;;  %v3069_v54 = vld [vmem:[%s4215_s4 + $0x60] ss:$16 sps:$4 sm:$0xff]  }
 0x18a   : > { %v2872_v31 = vpop.f32.mrf.mxu0 }
 0x18b   : > { %v2873_v56 = vadd.f32 %v2872_v31, %v2871_v55  ;;  %v3097_v55 = vld [vmem:[%s4212_s1 + $0x28] sm:$0xff]   ;;  %v3099_v31 = vld [vmem:[%s4212_s1 + $0x38] sm:$0xff]  }
 0x18c   : > { %v2874_v47 = vpop.f32.mrf.mxu0 }
 0x18d   : > { %v1849_v21 = vadd.f32 %v2873_v56, %v1800_v25 }
 0x18e   : > { %v2875_v36 = vpop.f32.mrf.mxu0 }
 0x18f   : > { %v2876_v5 = vadd.f32 %v2875_v36, %v2874_v47  ;;  %v3045_v47 = vld [vmem:[%s4215_s4 + $0xe0] ss:$16 sps:$4 sm:$0xff]   ;;  %v3048_v36 = vld [vmem:[%s4215_s4 + $0xe8] ss:$16 sps:$4 sm:$0xff]  }
 0x190   : > { %v2877_v33 = vpop.f32.mrf.mxu0  ;;  %2336 = vmatpush1.bf16.msra.mxu1 %v3045_v47 }
 0x191   : > { %v1852_v22 = vadd.f32 %v2876_v5, %v1803_v14  ;;  %v3089_v5 = vld [vmem:[%s4215_s4 + $0x4] ss:$16 sps:$4 sm:$0xff]   ;;  %v3090_v14 = vld [vmem:[%s4215_s4 + $0x8] ss:$16 sps:$4 sm:$0xff]  }
 0x192   : > { %v2878_v41 = vpop.f32.mrf.mxu0 }
 0x193   : > { %v2879_v51 = vadd.f32 %v2878_v41, %v2877_v33  ;;  %v3056_v33 = vld [vmem:[%s4215_s4 + $0xcc] ss:$16 sps:$4 sm:$0xff]   ;;  %v3054_v41 = vld [vmem:[%s4215_s4 + $0xc8] ss:$16 sps:$4 sm:$0xff]  }
 0x194   : > { %v2880_v43 = vpop.f32.mrf.mxu0 }
 0x195   : > { %v1857_v16 = vadd.f32 %v2879_v51, %v1808_v2  ;;  %v3080_v51 = vld [vmem:[%s4215_s4 + $0x4c] ss:$16 sps:$4 sm:$0xff]   ;;  %v3081_v2 = vld [vmem:[%s4215_s4 + $0x20] ss:$16 sps:$4 sm:$0xff]  }
 0x196   : > { %v2881_v3 = vpop.f32.mrf.mxu0 }
 0x197   : > { %v2882_v48 = vadd.f32 %v2881_v3, %v2880_v43  ;;  %v3057_v43 = vld [vmem:[%s4215_s4 + $0xa0] ss:$16 sps:$4 sm:$0xff]   ;;  %v3068_v3 = vld [vmem:[%s4215_s4 + $0x8c] ss:$16 sps:$4 sm:$0xff]  }
 0x198   : > { %v2899_v26 = vpop.f32.mrf.mxu1 }
 0x199   : > { %v1860_v7 = vadd.f32 %v2882_v48, %v1811_v60  ;;  %v3075_v48 = vld [vmem:[%s4215_s4 + $0x40] ss:$16 sps:$4 sm:$0xff]   ;;  %v3084_v60 = vld [vmem:[%s4215_s4 + $0x28] ss:$16 sps:$4 sm:$0xff]  }
 0x19a   : > { %v2900_v42 = vpop.f32.mrf.mxu1 }
 0x19b   : > { %v2901_v62 = vadd.f32 %v2900_v42, %v2899_v26  ;;  %v3059_v26 = vld [vmem:[%s4215_s4 + $0xa4] ss:$16 sps:$4 sm:$0xff]   ;;  %v3062_v42 = vld [vmem:[%s4215_s4 + $0xac] ss:$16 sps:$4 sm:$0xff]  }
 0x19c   : > { %v2902_v58 = vpop.f32.mrf.mxu1 }
 0x19d   : > { %v1898_v37 = vadd.f32 %v2901_v62, %v1849_v21 }
 0x19e   : > { %v2903_v44 = vpop.f32.mrf.mxu1 }
 0x19f   : > { %v2904_v35 = vadd.f32 %v2903_v44, %v2902_v58  ;;  %v3060_v58 = vld [vmem:[%s4215_s4 + $0xa8] ss:$16 sps:$4 sm:$0xff]   ;;  %v3065_v44 = vld [vmem:[%s4215_s4 + $0x84] ss:$16 sps:$4 sm:$0xff]  }
 0x1a0   : > { %v2905_v49 = vpop.f32.mrf.mxu1 }
 0x1a1   : > { %v1901_v57 = vadd.f32 %v2904_v35, %v1852_v22 }
 0x1a2   : > { %v2906_v61 = vpop.f32.mrf.mxu1 }
 0x1a3   : > { %v2907_v6 = vadd.f32 %v2906_v61, %v2905_v49  ;;  %v1912_v30 = vpack.c.bf16 %v1901_v57, %v1898_v37  ;;  %v3063_v49 = vld [vmem:[%s4215_s4 + $0x80] ss:$16 sps:$4 sm:$0xff]   ;;  %v3077_v61 = vld [vmem:[%s4215_s4 + $0x44] ss:$16 sps:$4 sm:$0xff]  }
 0x1a4   : > { %v2908_v1 = vpop.f32.mrf.mxu1 }
 0x1a5   : > { %v1906_v50 = vadd.f32 %v2907_v6, %v1857_v16  ;;  %v3092_v6 = vld [vmem:[%s4215_s4 + $0xc] ss:$16 sps:$4 sm:$0xff]  }
 0x1a6   : > { %v2909_v32 = vpop.f32.mrf.mxu1 }
 0x1a7   : > { %v2910_v19 = vadd.f32 %v2909_v32, %v2908_v1  ;;  %v3086_v1 = vld [vmem:[%s4215_s4 + $0x2c] ss:$16 sps:$4 sm:$0xff]  }
 0x1a9   : > { %v1909_v39 = vadd.f32 %v2910_v19, %v1860_v7 }
 0x1ab   : > { %v1913_v63 = vpack.c.bf16 %v1909_v39, %v1906_v50 }
 0x1ad   : > { %v2011_v27 = vand.u32 %v1913_v63, %v3236_v23  ;;  %v3095_v23 = vld [vmem:[%s4212_s1 + $0x18] sm:$0xff]  }
 0x1af   : > { %2921 = vmatprep.subr.bf16.mxu0 %v2011_v27 }
 0x1b0   : > { %2922 = vmatpush3.bf16.msra.mxu0 %v2011_v27 }
 0x1b1   : > { %2923 = vmatprep.subr.bf16.mxu0 %v1912_v30 }
 0x1b4   : > { %2924 = vmatpush3.bf16.msra.mxu0 %v1912_v30 }
 0x1b5   : > { %2376 = vmatprep.subr.bf16.mxu0 %v3050_v45 }
 0x1b7   : > { %2926 = vmatmul.mubr.msk.bf16.vlgmr.msra.gmra.mxu0 %vm560_vm2, %v3093_v13 }
 0x1b8   : > { %2929 = vmatprep.mubr.msk.bf16.mxu0 %vm560_vm2, %v3094_v28  ;;  %2377 = vmatpush1.bf16.msra.mxu0 %v3048_v36  ;;  %v1933_v56 = vpop.permute.xlu0 %1932 }
 0x1b9   : > { %2378 = vmatprep.subr.bf16.mxu0 %v3056_v33 }
 0x1bc   : > { %2379 = vmatpush1.bf16.msra.mxu0 %v3054_v41 }
 0x1bd   : > { %2380 = vmatprep.subr.bf16.mxu0 %v3062_v42 }
 0x1bf   : > { %2930 = vmatmul.mubr.msk.bf16.gmra.mxu0 %vm560_vm2, %v3095_v23 }
 0x1c0   : > { %2933 = vmatprep.mubr.msk.bf16.mxu0 %vm560_vm2, %v3096_v29  ;;  %2381 = vmatpush1.bf16.msra.mxu0 %v3060_v58 }
 0x1c1   : > { %2382 = vmatprep.subr.bf16.mxu0 %v3068_v3 }
 0x1c4   : > { %2383 = vmatpush1.bf16.msra.mxu0 %v3066_v52 }
 0x1c5   : > { %2384 = vmatprep.subr.bf16.mxu0 %v3074_v53 }
 0x1c7   : > { %2934 = vmatmul.mubr.msk.bf16.gmra.mxu0 %vm560_vm2, %v3097_v55 }
 0x1c8   : > { %2937 = vmatprep.mubr.msk.bf16.mxu0 %vm560_vm2, %v3098_v8  ;;  %2385 = vmatpush1.bf16.msra.mxu0 %v3072_v38 }
 0x1c9   : > { %2386 = vmatprep.subr.bf16.mxu0 %v3080_v51 }
 0x1cb   : > { %v1938_v19 = vpop.permute.xlu0 %1937 }
 0x1cc   : > { %2387 = vmatpush1.bf16.msra.mxu0 %v3078_v59 }
 0x1cd   : > { %2388 = vmatprep.subr.bf16.mxu0 %v3086_v1 }
 0x1cf   : > { %2938 = vmatmul.mubr.msk.bf16.gmra.mxu0 %vm560_vm2, %v3099_v31  ;;  %v1953_v63 = vpop.permute.xlu0 %1952 }
 0x1d0   : > { %2408 = vmatprep.mubr.bf16.mxu0 %v3124_v17  ;;  %v3053_v17 = vld [vmem:[%s4215_s4 + $0xc4] ss:$16 sps:$4 sm:$0xff]   ;;  %2389 = vmatpush1.bf16.msra.mxu0 %v3084_v60 }
 0x1d1   : > { %2337 = vmatprep.subr.bf16.mxu1 %v3053_v17  ;;  %2390 = vmatprep.subr.bf16.mxu0 %v3092_v6 }
 0x1d2   : > { %2338 = vmatpush1.bf16.msra.mxu1 %v3051_v40 }
 0x1d3   : > { %2339 = vmatprep.subr.bf16.mxu1 %v3059_v26  ;;  %v1963_v28 = vpop.permute.xlu0 %1962 }
 0x1d4   : > { %2391 = vmatpush1.bf16.msra.mxu0 %v3090_v14 }
 0x1d6   : > { %2340 = vmatpush1.bf16.msra.mxu1 %v3057_v43 }
 0x1d7   : > { %2341 = vmatprep.subr.bf16.mxu1 %v3065_v44  ;;  %v1973_v8 = vpop.permute.xlu0 %1972 }
 0x1da   : > { %2342 = vmatpush1.bf16.msra.mxu1 %v3063_v49 }
 0x1db   : > { %2343 = vmatprep.subr.bf16.mxu1 %v3071_v4  ;;  %v1983_v36 = vpop.permute.xlu0 %1982 }
 0x1de   : > { %2344 = vmatpush1.bf16.msra.mxu1 %v3069_v54 }
 0x1df   : > { %2345 = vmatprep.subr.bf16.mxu1 %v3077_v61 }
 0x1e2   : > { %2346 = vmatpush1.bf16.msra.mxu1 %v3075_v48 }
 0x1e3   : > { %2347 = vmatprep.subr.bf16.mxu1 %v3083_v0 }
 0x1e6   : > { %2348 = vmatpush1.bf16.msra.mxu1 %v3081_v2 }
 0x1e7   : > { %2349 = vmatprep.subr.bf16.mxu1 %v3089_v5 }
 0x1ea   : > { %2350 = vmatpush1.bf16.msra.mxu1 %v3087_v9 }
 0x277   : > { %v2927_v32 = vpop.f32.mrf.mxu0 }
 0x278   : > { %v2056_v50 = vadd.f32 %v2927_v32, %v3606_v10 }
 0x279   : > { %v2047_v16 = vpop.f32.mrf.mxu0 }
 0x27a   : > { %v2048_v7 = vadd.f32 %v2047_v16, %v1933_v56 }
 0x27b   : > { %v2928_v35 = vpop.f32.mrf.mxu0 }
 0x27c   : > { %2110 = vxpose.xlu0.b32.start [1/16] (narrow) %v2048_v7, 8  ;;  %v2059_v21 = vadd.f32 %v2928_v35, %v3612_v11 }
 0x27d   : > { %v2050_v25 = vpop.f32.mrf.mxu0 }
 0x27e   : > { %v2051_v22 = vadd.f32 %v2050_v25, %v1938_v19 }
 0x27f   : > { %v2931_v62 = vpop.f32.mrf.mxu0 }
 0x280   : > { %2111 = vxpose.xlu0.b32.cont [2/16] (narrow) %v2051_v22, 8  ;;  %v2072_v23 = vadd.f32 %v2931_v62, %v1963_v28 }
 0x281   : > { %v2063_v39 = vpop.f32.mrf.mxu0 }
 0x282   : > { %v2064_v37 = vadd.f32 %v2063_v39, %v1953_v63 }
 0x283   : > { %v2932_v57 = vpop.f32.mrf.mxu0 }
 0x284   : > { %2112 = vxpose.xlu0.b32.cont [3/16] (narrow) %v2056_v50, 8  ;;  %v2075_v10 = vadd.f32 %v2932_v57, %v3627_v15  ;;  %v1993_v15 = vpop.permute.xlu0 %1992 }
 0x285   : > { %v2066_v27 = vpop.f32.mrf.mxu0 }
 0x286   : > { %v2067_v30 = vadd.f32 %v2066_v27, %v3616_v12 }
 0x287   : > { %v2935_v13 = vpop.f32.mrf.mxu0 }
 0x288   : > { %2113 = vxpose.xlu0.b32.cont [4/16] (narrow) %v2059_v21, 8  ;;  %v2088_v12 = vadd.f32 %v2935_v13, %v1983_v36 }
 0x289   : > { %v2079_v29 = vpop.f32.mrf.mxu0 }
 0x28a   : > { %v2080_v11 = vadd.f32 %v2079_v29, %v1973_v8 }
 0x28b   : > { %v2936_v55 = vpop.f32.mrf.mxu0 }
 0x28c   : > { %2114 = vxpose.xlu0.b32.cont [5/16] (narrow) %v2064_v37, 8  ;;  %v2091_v17 = vadd.f32 %v2936_v55, %v3648_v20 }
 0x28d   : > { %v2082_v31 = vpop.f32.mrf.mxu0 }
 0x28e   : > { %v2083_v47 = vadd.f32 %v2082_v31, %v3637_v18  ;;  %v2003_v18 = vpop.permute.xlu0 %2002 }
 0x28f   : > { %v2939_v34 = vpop.f32.mrf.mxu0 }
 0x290   : > { %2115 = vxpose.xlu0.b32.cont [6/16] (narrow) %v2067_v30, 8  ;;  %v2104_v42 = vadd.f32 %v2939_v34, %v2003_v18 }
 0x291   : > { %v2095_v45 = vpop.f32.mrf.mxu0 }
 0x292   : > { %v2096_v40 = vadd.f32 %v2095_v45, %v1993_v15 }
 0x293   : > { %v2940_v33 = vpop.f32.mrf.mxu0 }
 0x294   : > { %2116 = vxpose.xlu0.b32.cont [7/16] (narrow) %v2072_v23, 8  ;;  %v2107_v43 = vadd.f32 %v2940_v33, %v3673_v24 }
 0x295   : > { %v2098_v41 = vpop.f32.mrf.mxu0 }
 0x296   : > { %v2099_v26 = vadd.f32 %v2098_v41, %v3658_v46 }
 0x298   : > { %2117 = vxpose.xlu0.b32.cont [8/16] (narrow) %v2075_v10, 8 }
 0x29c   : > { %2118 = vxpose.xlu0.b32.cont [9/16] (narrow) %v2080_v11, 8 }
 0x2a0   : > { %2119 = vxpose.xlu0.b32.cont [10/16] (narrow) %v2083_v47, 8 }
 0x2a4   : > { %2120 = vxpose.xlu0.b32.cont [11/16] (narrow) %v2088_v12, 8 }
 0x2a8   : > { %2121 = vxpose.xlu0.b32.cont [12/16] (narrow) %v2091_v17, 8 }
 0x2ac   : > { %2122 = vxpose.xlu0.b32.cont [13/16] (narrow) %v2096_v40, 8 }
 0x2b0   : > { %2123 = vxpose.xlu0.b32.cont [14/16] (narrow) %v2099_v26, 8 }
 0x2b4   : > { %2124 = vxpose.xlu0.b32.cont [15/16] (narrow) %v2104_v42, 8 }
 0x2b8   : > { %2125 = vxpose.xlu0.b32.end [16/16] (narrow) %v2107_v43, 8 }
 0x2f8   : > { %v2126_v58 = vpop.trf.xlu0 }
 0x2f9   : > { %v2142_v44 = vpack.c.bf16 %v2126_v58, %v2126_v58 }
 0x2fb   : > { %2368 = vmatmul.mubr.bf16.vlgmr.msra.gmra.mxu1 %v2142_v44  ;;  %2409 = vmatmul.mubr.bf16.vlgmr.msra.gmra.mxu0 %v2142_v44 }
 0x3bb   : > { %v2369_v20 = vpop.f32.mrf.mxu1  ;;  %v2410_v3 = vpop.f32.mrf.mxu0 }
 0x3bd   : > { %v2371_v46 = vpop.f32.mrf.mxu1  ;;  %v2412_v49 = vpop.f32.mrf.mxu0 }
 0x3be   : > { %v2421_v52 = vcombine.low %v2369_v20, %v2371_v46  ;;  %v2422_v4 = vcombine.low %v2410_v3, %v2412_v49 }
 0x3bf   : > { %v2373_v53 = vpop.f32.mrf.mxu1  ;;  %v2414_v24 = vpop.f32.mrf.mxu0 }
 0x3c0   : > { %2425 = vst [vmem:[%s318_s13] sm:$0xff] %v2421_v52  ;;  %2426 = vst [vmem:[%s318_s13 + $0x8] sm:$0xff] %v2422_v4 }
 0x3c1   : > { %v2374_v54 = vpop.f32.mrf.mxu1  ;;  %v2415_v38 = vpop.f32.mrf.mxu0 }
 0x3c2 PF: > { %p14_p10 = scmp.ge.s32.totalorder %s3180_s25, 6   ;;  %s4218_s21 = smov %s3118_s22 }
 0x3c3   : > { %s4219_s22 = smov %s3189_s28  ;;  %s4220_s23 = smov %s3180_s25 }
 0x3c4   :  { %16 = sbr.rel (!%p14_p10) target bundleno = 2 (0x2), region = 113 }

</bundles_post_ra>
